<compile_context>
chip_gen: v5e
topology: v5e:2x2
jax: 0.10.0
libtpu: 0.0.40
codegen_flags: <defaults>
</compile_context>

<pallas_src>
import functools

import jax
import jax.numpy as jnp
from jax.experimental import pallas as pl

EMB_DIM = 128
HID_DIM = 512


def _build_embedding(max_steps: int) -> jnp.ndarray:
    """Same table as DiffusionEmbedding._build_embedding (f32)."""
    steps = jnp.arange(max_steps, dtype=jnp.float32)[:, None]          # [T, 1]
    dims = jnp.arange(64, dtype=jnp.float32)[None, :]                  # [1, 64]
    table = steps * (10.0 ** (dims * 4.0 / 63.0))                      # [T, 64]
    return jnp.concatenate([jnp.sin(table), jnp.cos(table)], axis=1)   # [T, 128]


def _int8_w2_supported() -> bool:
    """int8 weight-only w2 on v5e/v6e per the perf review; bf16 elsewhere.

    The in-kernel dequant is an int8->bf16 cast + one per-column vmul, so no
    integer MXU is required; we still keep bf16 on v7x/unknown chips because
    the kernel is launch-overhead bound there and the DMA saving is negligible.
    """
    try:
        kind = jax.devices()[0].device_kind.lower()
    except Exception:
        return False
    return any(tag in kind for tag in ("v5e", "v5 lite", "v5litepod", "v6e", "v6 lite"))


def _silu(x):
    # sigmoid(x) == 0.5 * (tanh(x/2) + 1): a single EUP op, no overflow path.
    return x * (0.5 * (jnp.tanh(0.5 * x) + 1.0))


def _fused_kernel(max_steps, step_ref, emb_proj_ref, b1_ref, w2_ref,
                  w2_scale_ref, b2_ref, o_ref):
    # step_ref    : [B_pad, 1]     f32  diffusion steps (integer-valued or fractional)
    # emb_proj_ref: [T_pad, 512]   bf16 fused table = (embedding @ w1), zero-padded rows
    # b1_ref      : [1, 512]       f32
    # w2_ref      : [512, 512]     bf16 or int8 (weight-only quant)
    # w2_scale_ref: [1, 512]       f32  per-output-channel dequant scale (ones for bf16)
    # b2_ref      : [1, 512]       f32
    # o_ref       : [B_pad, 512]   f32
    t = step_ref[...]                                   # [B_pad, 1]
    low_f = jnp.floor(t)
    frac = t - low_f                                    # 0 for integer steps
    # NOTE: out-of-range steps are clipped (matches the reference below;
    # PyTorch would raise on out-of-range integer indexing instead).
    low_i = jnp.clip(low_f, 0.0, max_steps - 1).astype(jnp.int32)
    high_i = jnp.clip(jnp.ceil(t), 0.0, max_steps - 1).astype(jnp.int32)

    b_pad = t.shape[0]
    t_pad = emb_proj_ref.shape[0]
    col = jax.lax.broadcasted_iota(jnp.int32, (b_pad, t_pad), 1)
    # "Two-hot" lerp weights: (1-frac) at the low row, frac at the high row.
    # Integer steps: low == high, frac == 0 -> single weight of 1 (pure lookup).
    sel = (jnp.where(col == low_i, 1.0 - frac, 0.0)
           + jnp.where(col == high_i, frac, 0.0))       # [B_pad, T_pad] f32

    # Embedding gather + lerp + projection1 as ONE MXU matmul against the
    # pre-fused table (lerp is linear, so sel @ (emb @ w1) == (sel @ emb) @ w1).
    h = jnp.dot(sel.astype(jnp.bfloat16), emb_proj_ref[...],
                preferred_element_type=jnp.float32) + b1_ref[...]     # [B_pad, 512]
    h = _silu(h)

    # projection2: bf16 MXU with f32 accumulation.  For the int8-quantized
    # path the cast is the dequant-load and the scale row is applied to the
    # f32 accumulator; for bf16 weights the cast is a no-op and scale == 1.
    w2 = w2_ref[...].astype(jnp.bfloat16)
    h2 = jnp.dot(h.astype(jnp.bfloat16), w2, preferred_element_type=jnp.float32)
    h2 = h2 * w2_scale_ref[...] + b2_ref[...]
    o_ref[...] = _silu(h2)


def _run_fused(max_steps, steps_2d, emb_proj, b1, w2, w2_scale, b2):
    """steps_2d: [B_pad, 1] f32 -> [B_pad, 512] f32 via one Pallas call."""
    b_pad = steps_2d.shape[0]
    t_pad = emb_proj.shape[0]
    full = lambda shape: pl.BlockSpec(shape, lambda: tuple(0 for _ in shape))
    return pl.pallas_call(
        functools.partial(_fused_kernel, max_steps),
        out_shape=jax.ShapeDtypeStruct((b_pad, HID_DIM), jnp.float32),
        grid=(),
        in_specs=[
            full((b_pad, 1)),            # diffusion steps
            full((t_pad, HID_DIM)),      # fused embedding @ w1 table (bf16)
            full((1, HID_DIM)),          # b1
            full((HID_DIM, HID_DIM)),    # w2 (bf16 or int8)
            full((1, HID_DIM)),          # w2 dequant scale
            full((1, HID_DIM)),          # b2
        ],
        out_specs=full((b_pad, HID_DIM)),
    )(steps_2d, emb_proj, b1, w2, w2_scale, b2)


class DiffusionEmbeddingPallas:
    def __init__(self, max_steps: int, key, use_int8_w2=None):
        self.max_steps = max_steps
        if use_int8_w2 is None:
            use_int8_w2 = _int8_w2_supported()

        self.embedding = _build_embedding(max_steps)                  # [T, 128] f32
        t_pad = ((max_steps + 127) // 128) * 128                      # lane-friendly
        emb_pad = jnp.pad(self.embedding, ((0, t_pad - max_steps), (0, 0)))

        k1, k2, k3, k4 = jax.random.split(key, 4)
        # PyTorch nn.Linear default init: U(-1/sqrt(fan_in), 1/sqrt(fan_in)).
        bound1 = EMB_DIM ** -0.5
        bound2 = HID_DIM ** -0.5
        # f32 masters (stored [in, out], transposed vs torch).  Kept only for
        # the f32 reference check; the kernel uses the fused/quantized copies.
        self.w1_f32 = jax.random.uniform(k1, (EMB_DIM, HID_DIM), jnp.float32, -bound1, bound1)
        self.b1 = jax.random.uniform(k2, (1, HID_DIM), jnp.float32, -bound1, bound1)
        self.w2_f32 = jax.random.uniform(k3, (HID_DIM, HID_DIM), jnp.float32, -bound2, bound2)
        self.b2 = jax.random.uniform(k4, (1, HID_DIM), jnp.float32, -bound2, bound2)

        # Fold the sin/cos table into projection1 once at init (bf16 storage:
        # halves the dominant first-layer DMA and drops one in-kernel matmul).
        self.emb_proj = jnp.dot(emb_pad, self.w1_f32,
                                precision=jax.lax.Precision.HIGHEST
                                ).astype(jnp.bfloat16)                 # [T_pad, 512]

        if use_int8_w2:
            # Weight-only int8 per-output-channel quant of the dominant 512 KiB
            # weight; dequant happens in-kernel on the f32 accumulator.
            max_abs = jnp.maximum(
                jnp.max(jnp.abs(self.w2_f32), axis=0, keepdims=True), 1e-12)
            self.w2_scale = max_abs / 127.0                            # [1, 512] f32
            self.w2 = jnp.clip(jnp.round(self.w2_f32 / self.w2_scale),
                               -127, 127).astype(jnp.int8)
        else:
            self.w2 = self.w2_f32.astype(jnp.bfloat16)
            self.w2_scale = jnp.ones((1, HID_DIM), jnp.float32)

    def __call__(self, diffusion_step):
        # Integer and float paths collapse: float(int) is exact, frac == 0
        # reduces the in-kernel lerp to a pure table lookup.
        t = diffusion_step.astype(jnp.float32).reshape(-1)            # [B]
        b = t.shape[0]
        b_pad = max(16, ((b + 15) // 16) * 16)                        # bf16 sublane packing
        t = jnp.pad(t, (0, b_pad - b))[:, None]                       # [B_pad, 1]
        out = _run_fused(self.max_steps, t, self.emb_proj, self.b1,
                         self.w2, self.w2_scale, self.b2)
        return out[:b]

    def precompute_schedule(self, steps):
        """Perf-review option (c): when the sampling schedule is known, compute
        all [num_steps, 512] embeddings in ONE call before the loop and index
        per step, removing the recurring weight DMA + launch overhead."""
        return self(steps)


def _reference_matched(model: DiffusionEmbeddingPallas, diffusion_step):
    """Plain-JAX reference with the SAME numerics as the kernel
    (bf16 fused table, bf16/int8 w2 with f32 accumulation)."""
    t = diffusion_step.astype(jnp.float32)
    low_idx = jnp.clip(jnp.floor(t), 0, model.max_steps - 1).astype(jnp.int32)
    high_idx = jnp.clip(jnp.ceil(t), 0, model.max_steps - 1).astype(jnp.int32)
    frac = (t - jnp.floor(t))[..., None]
    emb_proj = model.emb_proj.astype(jnp.float32)
    low = jnp.take(emb_proj, low_idx, axis=0)
    high = jnp.take(emb_proj, high_idx, axis=0)
    h = low + (high - low) * frac + model.b1
    h = h * jax.nn.sigmoid(h)
    w2_bf = model.w2.astype(jnp.bfloat16)
    h2 = jnp.dot(h.astype(jnp.bfloat16), w2_bf,
                 preferred_element_type=jnp.float32) * model.w2_scale + model.b2
    return h2 * jax.nn.sigmoid(h2)


def _reference_module_f32(model: DiffusionEmbeddingPallas, diffusion_step):
    """Unquantized f32 reference following the original PyTorch module."""
    t = diffusion_step.astype(jnp.float32)
    low_idx = jnp.clip(jnp.floor(t), 0, model.max_steps - 1).astype(jnp.int32)
    high_idx = jnp.clip(jnp.ceil(t), 0, model.max_steps - 1).astype(jnp.int32)
    low = jnp.take(model.embedding, low_idx, axis=0)
    high = jnp.take(model.embedding, high_idx, axis=0)
    x = low + (high - low) * (t - jnp.floor(t))[..., None]
    h = jnp.dot(x, model.w1_f32, precision=jax.lax.Precision.HIGHEST) + model.b1
    h = h * jax.nn.sigmoid(h)
    h2 = jnp.dot(h, model.w2_f32, precision=jax.lax.Precision.HIGHEST) + model.b2
    return h2 * jax.nn.sigmoid(h2)


if __name__ == "__main__":
    key = jax.random.PRNGKey(0)
    max_steps = 50
    model = DiffusionEmbeddingPallas(max_steps, key)

    # Integer-step path.
    step_key = jax.random.fold_in(key, 123)
    diffusion_step = jax.random.randint(step_key, (2,), 0, max_steps, dtype=jnp.int32)

    out = jax.block_until_ready(model(diffusion_step))
    assert out.shape == (2, HID_DIM), out.shape
    ref = jax.block_until_ready(_reference_matched(model, diffusion_step))
    assert jnp.allclose(out, ref, atol=2e-3, rtol=2e-3), \
        "mismatch vs matched-numerics reference (int path)"
    ref32 = jax.block_until_ready(_reference_module_f32(model, diffusion_step))
    assert jnp.allclose(out, ref32, atol=2e-2, rtol=2e-2), \
        "mismatch vs f32 module semantics (int path)"

    # Float (lerp) path.
    t_float = jnp.array([1.5, 7.25], dtype=jnp.float32)
    out_f = jax.block_until_ready(model(t_float))
    ref_f = jax.block_until_ready(_reference_matched(model, t_float))
    assert jnp.allclose(out_f, ref_f, atol=2e-3, rtol=2e-3), \
        "mismatch vs matched-numerics reference (lerp path)"
    ref32_f = jax.block_until_ready(_reference_module_f32(model, t_float))
    assert jnp.allclose(out_f, ref32_f, atol=2e-2, rtol=2e-2), \
        "mismatch vs f32 module semantics (lerp path)"

    print("KERNEL_OK")
</pallas_src>

<mosaic_0001>
module attributes {stable_mosaic.version = 11 : i64} {
  func.func @_fused_kernel(%arg0: memref<16x1xf32, #tpu.memory_space<vmem>>, %arg1: memref<128x512xbf16, #tpu.memory_space<vmem>>, %arg2: memref<1x512xf32, #tpu.memory_space<vmem>>, %arg3: memref<512x512xbf16, #tpu.memory_space<vmem>>, %arg4: memref<1x512xf32, #tpu.memory_space<vmem>>, %arg5: memref<1x512xf32, #tpu.memory_space<vmem>>, %arg6: memref<16x512xf32, #tpu.memory_space<vmem>>) attributes {dimension_semantics = [], scalar_prefetch = 0 : i64, scratch_operands = 0 : i64, tpu.core_type = #tpu.core_type<tc>} {
    %c0 = arith.constant 0 : index
    %c0_0 = arith.constant 0 : index
    %0 = vector.load %arg0[%c0, %c0_0] : memref<16x1xf32, #tpu.memory_space<vmem>>, vector<16x1xf32>
    %1 = math.floor %0 : vector<16x1xf32>
    %2 = arith.subf %0, %1 : vector<16x1xf32>
    %cst = arith.constant 0.000000e+00 : f32
    %c49_i32 = arith.constant 49 : i32
    %3 = vector.broadcast %cst : f32 to vector<16x1xf32>
    %4 = arith.maximumf %3, %1 : vector<16x1xf32>
    %5 = arith.sitofp %c49_i32 : i32 to f32
    %6 = vector.broadcast %5 : f32 to vector<16x1xf32>
    %7 = arith.minimumf %6, %4 : vector<16x1xf32>
    %8 = arith.fptosi %7 : vector<16x1xf32> to vector<16x1xi32>
    %9 = math.ceil %0 : vector<16x1xf32>
    %cst_1 = arith.constant 0.000000e+00 : f32
    %c49_i32_2 = arith.constant 49 : i32
    %10 = vector.broadcast %cst_1 : f32 to vector<16x1xf32>
    %11 = arith.maximumf %10, %9 : vector<16x1xf32>
    %12 = arith.sitofp %c49_i32_2 : i32 to f32
    %13 = vector.broadcast %12 : f32 to vector<16x1xf32>
    %14 = arith.minimumf %13, %11 : vector<16x1xf32>
    %15 = arith.fptosi %14 : vector<16x1xf32> to vector<16x1xi32>
    %16 = tpu.iota {dimensions = array<i32: 1>} : vector<16x128xi32>
    %17 = vector.broadcast %8 : vector<16x1xi32> to vector<16x128xi32>
    %18 = arith.cmpi eq, %16, %17 : vector<16x128xi32>
    %cst_3 = arith.constant 1.000000e+00 : f32
    %19 = vector.broadcast %cst_3 : f32 to vector<16x1xf32>
    %20 = arith.subf %19, %2 : vector<16x1xf32>
    %cst_4 = arith.constant 0.000000e+00 : f32
    %21 = vector.shape_cast %20 : vector<16x1xf32> to vector<16x1xf32>
    %22 = vector.broadcast %21 : vector<16x1xf32> to vector<16x128xf32>
    %23 = vector.broadcast %cst_4 : f32 to vector<16x128xf32>
    %24 = arith.select %18, %22, %23 : vector<16x128xi1>, vector<16x128xf32>
    %25 = vector.broadcast %15 : vector<16x1xi32> to vector<16x128xi32>
    %26 = arith.cmpi eq, %16, %25 : vector<16x128xi32>
    %cst_5 = arith.constant 0.000000e+00 : f32
    %27 = vector.shape_cast %2 : vector<16x1xf32> to vector<16x1xf32>
    %28 = vector.broadcast %27 : vector<16x1xf32> to vector<16x128xf32>
    %29 = vector.broadcast %cst_5 : f32 to vector<16x128xf32>
    %30 = arith.select %26, %28, %29 : vector<16x128xi1>, vector<16x128xf32>
    %31 = arith.addf %24, %30 : vector<16x128xf32>
    %32 = arith.truncf %31 : vector<16x128xf32> to vector<16x128xbf16>
    %c0_6 = arith.constant 0 : index
    %c0_7 = arith.constant 0 : index
    %33 = vector.load %arg1[%c0_6, %c0_7] : memref<128x512xbf16, #tpu.memory_space<vmem>>, vector<128x512xbf16>
    %cst_8 = arith.constant dense<0.000000e+00> : vector<16x512xf32>
    %34 = tpu.matmul %32, %33, %cst_8 {dimension_numbers = #tpu.dot_dimension_numbers<[1], [0], [0], [1], [0, 0, 1, 1], [], []>} : vector<16x128xbf16>, vector<128x512xbf16>, vector<16x512xf32> -> vector<16x512xf32>
    %c0_9 = arith.constant 0 : index
    %c0_10 = arith.constant 0 : index
    %35 = vector.load %arg2[%c0_9, %c0_10] : memref<1x512xf32, #tpu.memory_space<vmem>>, vector<1x512xf32>
    %36 = vector.broadcast %35 : vector<1x512xf32> to vector<16x512xf32>
    %37 = arith.addf %34, %36 : vector<16x512xf32>
    %cst_11 = arith.constant 5.000000e-01 : f32
    %38 = vector.broadcast %cst_11 : f32 to vector<16x512xf32>
    %39 = arith.mulf %38, %37 : vector<16x512xf32>
    %40 = math.tanh %39 : vector<16x512xf32>
    %cst_12 = arith.constant 1.000000e+00 : f32
    %41 = vector.broadcast %cst_12 : f32 to vector<16x512xf32>
    %42 = arith.addf %40, %41 : vector<16x512xf32>
    %cst_13 = arith.constant 5.000000e-01 : f32
    %43 = vector.broadcast %cst_13 : f32 to vector<16x512xf32>
    %44 = arith.mulf %43, %42 : vector<16x512xf32>
    %45 = arith.mulf %37, %44 : vector<16x512xf32>
    %c0_14 = arith.constant 0 : index
    %c0_15 = arith.constant 0 : index
    %46 = vector.load %arg3[%c0_14, %c0_15] : memref<512x512xbf16, #tpu.memory_space<vmem>>, vector<512x512xbf16>
    %47 = arith.truncf %45 : vector<16x512xf32> to vector<16x512xbf16>
    %cst_16 = arith.constant dense<0.000000e+00> : vector<16x512xf32>
    %48 = tpu.matmul %47, %46, %cst_16 {dimension_numbers = #tpu.dot_dimension_numbers<[1], [0], [0], [1], [0, 0, 1, 1], [], []>} : vector<16x512xbf16>, vector<512x512xbf16>, vector<16x512xf32> -> vector<16x512xf32>
    %c0_17 = arith.constant 0 : index
    %c0_18 = arith.constant 0 : index
    %49 = vector.load %arg4[%c0_17, %c0_18] : memref<1x512xf32, #tpu.memory_space<vmem>>, vector<1x512xf32>
    %50 = vector.broadcast %49 : vector<1x512xf32> to vector<16x512xf32>
    %51 = arith.mulf %48, %50 : vector<16x512xf32>
    %c0_19 = arith.constant 0 : index
    %c0_20 = arith.constant 0 : index
    %52 = vector.load %arg5[%c0_19, %c0_20] : memref<1x512xf32, #tpu.memory_space<vmem>>, vector<1x512xf32>
    %53 = vector.broadcast %52 : vector<1x512xf32> to vector<16x512xf32>
    %54 = arith.addf %51, %53 : vector<16x512xf32>
    %cst_21 = arith.constant 5.000000e-01 : f32
    %55 = vector.broadcast %cst_21 : f32 to vector<16x512xf32>
    %56 = arith.mulf %55, %54 : vector<16x512xf32>
    %57 = math.tanh %56 : vector<16x512xf32>
    %cst_22 = arith.constant 1.000000e+00 : f32
    %58 = vector.broadcast %cst_22 : f32 to vector<16x512xf32>
    %59 = arith.addf %57, %58 : vector<16x512xf32>
    %cst_23 = arith.constant 5.000000e-01 : f32
    %60 = vector.broadcast %cst_23 : f32 to vector<16x512xf32>
    %61 = arith.mulf %60, %59 : vector<16x512xf32>
    %62 = arith.mulf %54, %61 : vector<16x512xf32>
    %c0_24 = arith.constant 0 : index
    %c0_25 = arith.constant 0 : index
    %63 = vector.load %arg6[%c0_24, %c0_25] : memref<16x512xf32, #tpu.memory_space<vmem>>, vector<16x512xf32>
    tpu.vector_store %arg6[%c0_24, %c0_25], %62 {strides = array<i32>} : memref<16x512xf32, #tpu.memory_space<vmem>>, vector<16x512xf32>,
    return
  }
}

</mosaic_0001>

<bundles_post_ra>
// kernel: tpu_custom_call.1
= control target key start
LH: loop header
LB: loop body
LE: loop exit
PB: predicated region body
PF: predicated region fallthrough
CT: control target
= control target key end

     0   :  { %11 = vsyncpa [#allocation3], 0  ;;  %s2577_s0 = inlined_call_operand.vmem [shape: f32[16,1], index: 0, kind: input, shape index: {}]   ;;  %s2578_s1 = inlined_call_operand.hbm [shape: bf16[128,512], index: 1, kind: input, shape index: {}]   ;;  %s2579_s2 = inlined_call_operand.vmem [shape: f32[1,512], index: 2, kind: input, shape index: {}]   ;;  %s2580_s3 = inlined_call_operand.hbm [shape: bf16[512,512], index: 3, kind: input, shape index: {}]   ;;  %s2581_s4 = inlined_call_operand.vmem [shape: f32[1,512], index: 4, kind: input, shape index: {}]   ;;  %s2582_s5 = inlined_call_operand.vmem [shape: f32[1,512], index: 5, kind: input, shape index: {}]   ;;  %s2583_s6 = inlined_call_operand.hbm [shape: f32[16,512], index: 6, kind: output, shape index: {}]  }
   0x1   :  { %12 = vsyncpa [#allocation6], 0 }
   0x2   :  { %13 = vsyncpa [#allocation4], 0  ;;  %s20_s23 = sshll.u32 %s2578_s1, 4  ;;  %s2450_s24 = smov [#allocation2]   ;;  %s21_s23 = int_to_ptr.hbm [resolvable:$true] %s20_s23 }
   0x3   :  { %s22_s25 = sshll.u32 %s2450_s24, 4  ;;  %s35_s28 = sshll.u32 %s2580_s3, 4  ;;  %s23_s25 = int_to_ptr.vmem [resolvable:$true] %s22_s25  ;;  %s36_s28 = int_to_ptr.hbm [resolvable:$true] %s35_s28 }
   0x4   :  { %s2451_s29 = smov 256   ;;  %s2452_s30 = smov 16  }
   0x5   :  { %28 = dma.hbm_to_vmem [thread:$0]  %s21_s23, 4096, %s23_s25, [#allocation3], %s2451_s29, %s2451_s29, %s2452_s30  }
   0x6   :  { %s2453_s7 = smov [#allocation5]  }
   0x7   :  { %s37_s8 = sshll.u32 %s2453_s7, 4  ;;  %s38_s8 = int_to_ptr.vmem [resolvable:$true] %s37_s8 }
   0x8   :  { %43 = dma.hbm_to_vmem [thread:$0]  %s36_s28, 16384, %s38_s8, [#allocation6], %s2451_s29, %s2451_s29, %s2452_s30  }
   0x9   :  { %2444 = dma.done.wait [#allocation3], 4096  }
   0xa   :  { %2445 = vsyncadd [#allocation3], 4294963200 }
   0xb   :  { %2446 = dma.done.wait [#allocation6], 16384  }
   0xc   :  { %2447 = vsyncadd [#allocation6], 4294950912  ;;  %v2454_v0 = vmov 0   ;;  %v56_v1 = vld [vmem:[%s2577_s0] sm:$0xff]  ;;  %v57_v2 = vld [vmem:[%s2577_s0 + $0x8] sm:$0xff]  ;;  %s1507_s17 = sshll.u32 %s2583_s6, 4  ;;  %s1508_s17 = int_to_ptr.hbm [resolvable:$true] %s1507_s17 }
   0xd   :  { %2339 = vset.pattern.permute.xlu1 %v2454_v0  ;;  %2338 = vset.pattern.permute.xlu0 %v2454_v0  ;;  %v1635_v3 = vld [vmem:[#allocation2 + $0xe0] sm:$0xf]  ;;  %v68_v4 = vceil.f32 %v56_v1  ;;  %v58_v5 = vfloor.f32 %v56_v1  ;;  %v69_v6 = vceil.f32 %v57_v2  ;;  %v59_v7 = vfloor.f32 %v57_v2  ;;  %v2191_v8 = vld [vmem:[#allocation2 + $0xec] sm:$0xf0]  ;;  %v2189_v9 = vld [vmem:[#allocation2 + $0xe4] sm:$0xf] }
   0xe   :  { %2337 = vset.pattern.permute.xlu2 %v2454_v0  ;;  %v1637_v10 = vld [vmem:[#allocation2 + $0xf0] sm:$0xf0]  ;;  %v1636_v11 = vor.u32 %v2191_v8, %v1635_v3  ;;  %v1643_v13 = vld [vmem:[#allocation2 + $0xe8] sm:$0xf]  ;;  %v2192_v14 = vld [vmem:[#allocation2 + $0xf4] sm:$0xf0] }
   0xf   :  { %v1640_v12 = vor.u32 %v2189_v9, %v1637_v10  ;;  %v2190_v15 = vld [vmem:[#allocation2 + $0xec] sm:$0xf]  ;;  %v70_v16 = vmax.f32 %v68_v4, 0.0  ;;  %v62_v17 = vmax.f32 %v58_v5, 0.0  ;;  %v71_v18 = vmax.f32 %v69_v6, 0.0  ;;  %s2456_s18 = smov 512  }
  0x10   :  { %v63_v19 = vmax.f32 %v59_v7, 0.0  ;;  %v1645_v20 = vld [vmem:[#allocation2 + $0xf8] sm:$0xf0]  ;;  %v60_v21 = vsub.f32 %v56_v1, %v58_v5  ;;  %325 = vmatpush.bf16.msra.mxu0 %v1636_v11  ;;  %v1644_v22 = vor.u32 %v2192_v14, %v1643_v13  ;;  %v1619_v23 = vld [vmem:[#allocation2 + $0xc0] sm:$0xf]  ;;  %v61_v50 = vsub.f32 %v57_v2, %v59_v7  ;;  %s2457_s19 = smov 32  }
  0x11   :  { %339 = vmatpush.bf16.msra.mxu1 %v1640_v12  ;;  %v2187_v24 = vld [vmem:[#allocation2 + $0xcc] sm:$0xf0]  ;;  %v2185_v25 = vld [vmem:[#allocation2 + $0xc4] sm:$0xf]  ;;  %v72_v26 = vmin.f32 %v70_v16, 49.0  ;;  %v64_v27 = vmin.f32 %v62_v17, 49.0  ;;  %v1648_v32 = vor.u32 %v2190_v15, %v1645_v20 }
  0x12   :  { %v73_v28 = vmin.f32 %v71_v18, 49.0  ;;  %v1621_v29 = vld [vmem:[#allocation2 + $0xd0] sm:$0xf0]  ;;  %v65_v30 = vmin.f32 %v63_v19, 49.0  ;;  %v86_v31 = vsub.f32 1.0, %v60_v21  ;;  %353 = vmatpush.bf16.msra.mxu2 %v1644_v22  ;;  %v1620_v33 = vor.u32 %v2187_v24, %v1619_v23 }
  0x13   :  { %v1627_v34 = vld [vmem:[#allocation2 + $0xc8] sm:$0xf]  ;;  %v2188_v35 = vld [vmem:[#allocation2 + $0xd4] sm:$0xf0]  ;;  %v2326_v36 = vcvt.f32.s32 %v72_v26  ;;  %v2322_v37 = vcvt.f32.s32 %v64_v27  ;;  %v2186_v38 = vld [vmem:[#allocation2 + $0xcc] sm:$0xf]  ;;  %367 = vmatpush.bf16.msra.mxu3 %v1648_v32  ;;  %v1624_v41 = vor.u32 %v2185_v25, %v1621_v29 }
  0x14   :  { %v1629_v39 = vld [vmem:[#allocation2 + $0xd8] sm:$0xf0]  ;;  %v1603_v40 = vld [vmem:[#allocation2 + $0xa0] sm:$0xf]  ;;  %90 = vperm.xlu2 %2337, %v86_v31   ;;  %v1628_v42 = vor.u32 %v2188_v35, %v1627_v34  ;;  %v2183_v44 = vld [vmem:[#allocation2 + $0xac] sm:$0xf0]  ;;  %326 = vmatpush.bf16.msra.mxu0 %v1620_v33  ;;  %v2328_v57 = vcvt.f32.s32 %v73_v28  ;;  %v2324_v58 = vcvt.f32.s32 %v65_v30 }
  0x15   :  { %v1632_v43 = vor.u32 %v2186_v38, %v1629_v39  ;;  %v2181_v45 = vld [vmem:[#allocation2 + $0xa4] sm:$0xf]  ;;  %v1605_v46 = vld [vmem:[#allocation2 + $0xb0] sm:$0xf0]  ;;  %101 = vperm.xlu1 %2339, %v2326_v36   ;;  %79 = vperm.xlu0 %2338, %v2322_v37   ;;  %v1611_v47 = vld [vmem:[#allocation2 + $0xa8] sm:$0xf]  ;;  %v1604_v51 = vor.u32 %v2183_v44, %v1603_v40 }
  0x16   :  { %v2184_v48 = vld [vmem:[#allocation2 + $0xb4] sm:$0xf0]  ;;  %v2182_v49 = vld [vmem:[#allocation2 + $0xac] sm:$0xf]  ;;  %340 = vmatpush.bf16.msra.mxu1 %v1624_v41  ;;  %v1608_v52 = vor.u32 %v2181_v45, %v1605_v46  ;;  %v1613_v53 = vld [vmem:[#allocation2 + $0xb8] sm:$0xf0]  ;;  %354 = vmatpush.bf16.msra.mxu2 %v1628_v42 }
  0x17   :  { %v1612_v54 = vor.u32 %v2184_v48, %v1611_v47  ;;  %v87_v55 = vsub.f32 1.0, %v61_v50  ;;  %368 = vmatpush.bf16.msra.mxu3 %v1632_v43  ;;  %v1616_v56 = vor.u32 %v2182_v49, %v1613_v53  ;;  %v1587_v59 = vld [vmem:[#allocation2 + $0x80] sm:$0xf]  ;;  %v2179_v60 = vld [vmem:[#allocation2 + $0x8c] sm:$0xf0] }
  0x18   :  { %327 = vmatpush.bf16.msra.mxu0 %v1604_v51  ;;  %v2177_v61 = vld [vmem:[#allocation2 + $0x84] sm:$0xf]  ;;  %v1588_v62 = vor.u32 %v2179_v60, %v1587_v59  ;;  %v1589_v63 = vld [vmem:[#allocation2 + $0x90] sm:$0xf0]  ;;  %v1595_v0 = vld [vmem:[#allocation2 + $0x88] sm:$0xf] }
  0x19   :  { %v2180_v1 = vld [vmem:[#allocation2 + $0x94] sm:$0xf0]  ;;  %v1592_v2 = vor.u32 %v2177_v61, %v1589_v63  ;;  %v2178_v4 = vld [vmem:[#allocation2 + $0x8c] sm:$0xf]  ;;  %v1597_v5 = vld [vmem:[#allocation2 + $0x98] sm:$0xf0] }
  0x1a   :  { %341 = vmatpush.bf16.msra.mxu1 %v1608_v52  ;;  %355 = vmatpush.bf16.msra.mxu2 %v1612_v54  ;;  %v1596_v3 = vor.u32 %v2180_v1, %v1595_v0  ;;  %v1571_v6 = vld [vmem:[#allocation2 + $0x60] sm:$0xf]  ;;  %v1600_v7 = vor.u32 %v2178_v4, %v1597_v5  ;;  %v2175_v8 = vld [vmem:[#allocation2 + $0x6c] sm:$0xf0]  ;;  %v2173_v9 = vld [vmem:[#allocation2 + $0x64] sm:$0xf] }
  0x1b   :  { %369 = vmatpush.bf16.msra.mxu3 %v1616_v56  ;;  %v1573_v10 = vld [vmem:[#allocation2 + $0x70] sm:$0xf0]  ;;  %v1572_v11 = vor.u32 %v2175_v8, %v1571_v6  ;;  %v1579_v13 = vld [vmem:[#allocation2 + $0x68] sm:$0xf]  ;;  %v2176_v14 = vld [vmem:[#allocation2 + $0x74] sm:$0xf0] }
  0x1c   :  { %95 = vperm.xlu2 %2337, %v87_v55   ;;  %328 = vmatpush.bf16.msra.mxu0 %v1588_v62  ;;  %v1576_v12 = vor.u32 %v2173_v9, %v1573_v10  ;;  %v2174_v15 = vld [vmem:[#allocation2 + $0x6c] sm:$0xf]  ;;  %v1580_v16 = vor.u32 %v2176_v14, %v1579_v13  ;;  %v1581_v17 = vld [vmem:[#allocation2 + $0x78] sm:$0xf0]  ;;  %v1555_v19 = vld [vmem:[#allocation2 + $0x40] sm:$0xf] }
  0x1d   :  { %104 = vperm.xlu1 %2339, %v2328_v57   ;;  %82 = vperm.xlu0 %2338, %v2324_v58   ;;  %v1584_v18 = vor.u32 %v2174_v15, %v1581_v17  ;;  %v2171_v20 = vld [vmem:[#allocation2 + $0x4c] sm:$0xf0]  ;;  %v1557_v23 = vld [vmem:[#allocation2 + $0x50] sm:$0xf0]  ;;  %v1563_v24 = vld [vmem:[#allocation2 + $0x48] sm:$0xf] }
  0x1e   :  { %342 = vmatpush.bf16.msra.mxu1 %v1592_v2  ;;  %356 = vmatpush.bf16.msra.mxu2 %v1596_v3  ;;  %v1556_v22 = vor.u32 %v2171_v20, %v1555_v19  ;;  %v2172_v25 = vld [vmem:[#allocation2 + $0x54] sm:$0xf0]  ;;  %v2170_v28 = vld [vmem:[#allocation2 + $0x4c] sm:$0xf]  ;;  %v1565_v29 = vld [vmem:[#allocation2 + $0x58] sm:$0xf0] }
  0x1f   :  { %370 = vmatpush.bf16.msra.mxu3 %v1600_v7  ;;  %v1564_v27 = vor.u32 %v2172_v25, %v1563_v24  ;;  %v1539_v30 = vld [vmem:[#allocation2 + $0x20] sm:$0xf]  ;;  %v1568_v31 = vor.u32 %v2170_v28, %v1565_v29  ;;  %v2167_v32 = vld [vmem:[#allocation2 + $0x2c] sm:$0xf0]  ;;  %v2165_v33 = vld [vmem:[#allocation2 + $0x24] sm:$0xf] }
  0x20   :  { %329 = vmatpush.bf16.msra.mxu0 %v1572_v11  ;;  %v1541_v34 = vld [vmem:[#allocation2 + $0x30] sm:$0xf0]  ;;  %v1540_v35 = vor.u32 %v2167_v32, %v1539_v30  ;;  %v1547_v37 = vld [vmem:[#allocation2 + $0x28] sm:$0xf]  ;;  %v2168_v38 = vld [vmem:[#allocation2 + $0x34] sm:$0xf0] }
  0x21   :  { %v1544_v36 = vor.u32 %v2165_v33, %v1541_v34  ;;  %v2166_v39 = vld [vmem:[#allocation2 + $0x2c] sm:$0xf]  ;;  %v1548_v40 = vor.u32 %v2168_v38, %v1547_v37  ;;  %v1549_v41 = vld [vmem:[#allocation2 + $0x38] sm:$0xf0]  ;;  %v1523_v43 = vld [vmem:[#allocation2] sm:$0xf] }
  0x22   :  { %343 = vmatpush.bf16.msra.mxu1 %v1576_v12  ;;  %357 = vmatpush.bf16.msra.mxu2 %v1580_v16  ;;  %v1552_v42 = vor.u32 %v2166_v39, %v1549_v41  ;;  %v2163_v44 = vld [vmem:[#allocation2 + $0xc] sm:$0xf0]  ;;  %v2161_v45 = vld [vmem:[#allocation2 + $0x4] sm:$0xf]  ;;  %v1525_v47 = vld [vmem:[#allocation2 + $0x10] sm:$0xf0] }
  0x23   :  { %371 = vmatpush.bf16.msra.mxu3 %v1584_v18  ;;  %v1524_v46 = vor.u32 %v2163_v44, %v1523_v43  ;;  %v1531_v48 = vld [vmem:[#allocation2 + $0x8] sm:$0xf]  ;;  %v2164_v49 = vld [vmem:[#allocation2 + $0x14] sm:$0xf0]  ;;  %v2162_v52 = vld [vmem:[#allocation2 + $0xc] sm:$0xf]  ;;  %v76_v44 = vlaneseq }
  0x24   :  { %330 = vmatpush.bf16.msra.mxu0 %v1556_v22  ;;  %v1532_v51 = vor.u32 %v2164_v49, %v1531_v48  ;;  %v1533_v53 = vld [vmem:[#allocation2 + $0x18] sm:$0xf0]  ;;  %v1763_v55 = vld [vmem:[#allocation5 + $0xe0] sm:$0xf]  ;;  %v2223_v56 = vld [vmem:[#allocation5 + $0xec] sm:$0xf0] }
  0x25   :  { %115 = vperm.xlu1 %2339, %v61_v50   ;;  %110 = vperm.xlu0 %2338, %v60_v21   ;;  %v2169_v21 = vld [vmem:[#allocation2 + $0x44] sm:$0xf]  ;;  %v1528_v50 = vor.u32 %v2161_v45, %v1525_v47  ;;  %v1536_v54 = vor.u32 %v2162_v52, %v1533_v53  ;;  %v1891_v57 = vld [vmem:[#allocation5 + $0x1e0] sm:$0xf]  ;;  %v1764_v58 = vor.u32 %v2223_v56, %v1763_v55  ;;  %v2255_v59 = vld [vmem:[#allocation5 + $0x1ec] sm:$0xf0] }
  0x26   :  { %v1560_v26 = vor.u32 %v2169_v21, %v1557_v23  ;;  %358 = vmatpush.bf16.msra.mxu2 %v1564_v27  ;;  %v1747_v60 = vld [vmem:[#allocation5 + $0xc0] sm:$0xf]  ;;  %v2219_v61 = vld [vmem:[#allocation5 + $0xcc] sm:$0xf0]  ;;  %v1892_v62 = vor.u32 %v2255_v59, %v1891_v57  ;;  %v77_v59 = vand.u32 127, %v76_v44 }
  0x27   :  { %372 = vmatpush.bf16.msra.mxu3 %v1568_v31  ;;  %v1875_v63 = vld [vmem:[#allocation5 + $0x1c0] sm:$0xf]  ;;  %v2251_v0 = vld [vmem:[#allocation5 + $0x1cc] sm:$0xf0]  ;;  %v1748_v2 = vor.u32 %v2219_v61, %v1747_v60  ;;  %v1877_v44 = vld [vmem:[#allocation5 + $0x1d0] sm:$0xf0] }
  0x28   :  { %344 = vmatpush.bf16.msra.mxu1 %v1560_v26  ;;  %331 = vmatpush.bf16.msra.mxu0 %v1540_v35  ;;  %v2019_v1 = vld [vmem:[#allocation5 + $0x2e0] sm:$0xf]  ;;  %v2287_v3 = vld [vmem:[#allocation5 + $0x2ec] sm:$0xf0]  ;;  %v1876_v6 = vor.u32 %v2251_v0, %v1875_v63 }
  0x29   :  { %v2147_v4 = vld [vmem:[#allocation5 + $0x3e0] sm:$0xf]  ;;  %v2319_v5 = vld [vmem:[#allocation5 + $0x3ec] sm:$0xf0]  ;;  %v2020_v7 = vor.u32 %v2287_v3, %v2019_v1 }
  0x2a   :  { %359 = vmatpush.bf16.msra.mxu2 %v1548_v40  ;;  %v2148_v8 = vor.u32 %v2319_v5, %v2147_v4  ;;  %v1731_v9 = vld [vmem:[#allocation5 + $0xa0] sm:$0xf]  ;;  %v2215_v10 = vld [vmem:[#allocation5 + $0xac] sm:$0xf0] }
  0x2b   :  { %373 = vmatpush.bf16.msra.mxu3 %v1552_v42  ;;  %v1859_v11 = vld [vmem:[#allocation5 + $0x1a0] sm:$0xf]  ;;  %v2247_v12 = vld [vmem:[#allocation5 + $0x1ac] sm:$0xf0]  ;;  %v1732_v18 = vor.u32 %v2215_v10, %v1731_v9 }
  0x2c   :  { %345 = vmatpush.bf16.msra.mxu1 %v1544_v36  ;;  %332 = vmatpush.bf16.msra.mxu0 %v1524_v46  ;;  %v2003_v13 = vld [vmem:[#allocation5 + $0x2c0] sm:$0xf]  ;;  %v2283_v14 = vld [vmem:[#allocation5 + $0x2cc] sm:$0xf0]  ;;  %v1860_v22 = vor.u32 %v2247_v12, %v1859_v11 }
  0x2d   :  { %v2004_v15 = vor.u32 %v2283_v14, %v2003_v13  ;;  %v2131_v16 = vld [vmem:[#allocation5 + $0x3c0] sm:$0xf]  ;;  %v2315_v17 = vld [vmem:[#allocation5 + $0x3cc] sm:$0xf0] }
  0x2e   :  { %360 = vmatpush.bf16.msra.mxu2 %v1532_v51  ;;  %v2132_v19 = vor.u32 %v2315_v17, %v2131_v16  ;;  %v1715_v20 = vld [vmem:[#allocation5 + $0x80] sm:$0xf]  ;;  %v2211_v21 = vld [vmem:[#allocation5 + $0x8c] sm:$0xf0] }
  0x2f   :  { %374 = vmatpush.bf16.msra.mxu3 %v1536_v54  ;;  %v1987_v23 = vld [vmem:[#allocation5 + $0x2a0] sm:$0xf]  ;;  %v2279_v24 = vld [vmem:[#allocation5 + $0x2ac] sm:$0xf0]  ;;  %v1716_v33 = vor.u32 %v2211_v21, %v1715_v20 }
  0x30   :  { %346 = vmatpush.bf16.msra.mxu1 %v1528_v50  ;;  %1193 = vmatpush.bf16.msrb.mxu0 %v1764_v58  ;;  %v2115_v25 = vld [vmem:[#allocation5 + $0x3a0] sm:$0xf]  ;;  %v2243_v29 = vld [vmem:[#allocation5 + $0x18c] sm:$0xf0]  ;;  %v1988_v31 = vor.u32 %v2279_v24, %v1987_v23  ;;  %v2221_v23 = vld [vmem:[#allocation5 + $0xe4] sm:$0xf] }
  0x31   :  { %v1843_v28 = vld [vmem:[#allocation5 + $0x180] sm:$0xf]  ;;  %v2311_v30 = vld [vmem:[#allocation5 + $0x3ac] sm:$0xf0] }
  0x32   :  { %1221 = vmatpush.bf16.msrb.mxu2 %v2020_v7  ;;  %v2116_v32 = vor.u32 %v2311_v30, %v2115_v25  ;;  %v1971_v34 = vld [vmem:[#allocation5 + $0x280] sm:$0xf]  ;;  %v2275_v35 = vld [vmem:[#allocation5 + $0x28c] sm:$0xf0]  ;;  %v1844_v37 = vor.u32 %v2243_v29, %v1843_v28  ;;  %v2253_v28 = vld [vmem:[#allocation5 + $0x1e4] sm:$0xf] }
  0x33   :  { %1235 = vmatpush.bf16.msrb.mxu3 %v2148_v8  ;;  %v2099_v36 = vld [vmem:[#allocation5 + $0x380] sm:$0xf]  ;;  %v2207_v39 = vld [vmem:[#allocation5 + $0x6c] sm:$0xf0]  ;;  %v1972_v45 = vor.u32 %v2275_v35, %v1971_v34  ;;  %v1893_v29 = vld [vmem:[#allocation5 + $0x1f0] sm:$0xf0] }
  0x34   :  { %1207 = vmatpush.bf16.msrb.mxu1 %v1892_v62  ;;  %1194 = vmatpush.bf16.msrb.mxu0 %v1748_v2  ;;  %v1699_v38 = vld [vmem:[#allocation5 + $0x60] sm:$0xf]  ;;  %v2307_v40 = vld [vmem:[#allocation5 + $0x38c] sm:$0xf0] }
  0x35   :  { %v1827_v42 = vld [vmem:[#allocation5 + $0x160] sm:$0xf]  ;;  %v2239_v43 = vld [vmem:[#allocation5 + $0x16c] sm:$0xf0]  ;;  %v2100_v46 = vor.u32 %v2307_v40, %v2099_v36  ;;  %v1700_v48 = vor.u32 %v2207_v39, %v1699_v38  ;;  %v2217_v40 = vld [vmem:[#allocation5 + $0xc4] sm:$0xf] }
  0x36   :  { %1222 = vmatpush.bf16.msrb.mxu2 %v2004_v15  ;;  %v1955_v47 = vld [vmem:[#allocation5 + $0x260] sm:$0xf]  ;;  %v2271_v49 = vld [vmem:[#allocation5 + $0x26c] sm:$0xf0]  ;;  %v1828_v52 = vor.u32 %v2239_v43, %v1827_v42  ;;  %v2249_v42 = vld [vmem:[#allocation5 + $0x1c4] sm:$0xf] }
  0x37   :  { %1236 = vmatpush.bf16.msrb.mxu3 %v2132_v19  ;;  %v2083_v50 = vld [vmem:[#allocation5 + $0x360] sm:$0xf]  ;;  %v2303_v51 = vld [vmem:[#allocation5 + $0x36c] sm:$0xf0]  ;;  %v1956_v60 = vor.u32 %v2271_v49, %v1955_v47  ;;  %v1880_v47 = vor.u32 %v2249_v42, %v1877_v44  ;;  %v2197_v42 = vld [vmem:[#allocation5 + $0x24] sm:$0xf] }
  0x38   :  { %1208 = vmatpush.bf16.msrb.mxu1 %v1876_v6  ;;  %1195 = vmatpush.bf16.msrb.mxu0 %v1732_v18  ;;  %v1683_v53 = vld [vmem:[#allocation5 + $0x40] sm:$0xf]  ;;  %v2203_v54 = vld [vmem:[#allocation5 + $0x4c] sm:$0xf0]  ;;  %v2084_v61 = vor.u32 %v2303_v51, %v2083_v50  ;;  %v2285_v51 = vld [vmem:[#allocation5 + $0x2e4] sm:$0xf] }
  0x39   :  { %v1811_v57 = vld [vmem:[#allocation5 + $0x140] sm:$0xf]  ;;  %v2235_v58 = vld [vmem:[#allocation5 + $0x14c] sm:$0xf0]  ;;  %v1684_v63 = vor.u32 %v2203_v54, %v1683_v53  ;;  %v2021_v53 = vld [vmem:[#allocation5 + $0x2f0] sm:$0xf0] }
  0x3a   :  { %1223 = vmatpush.bf16.msrb.mxu2 %v1988_v31  ;;  %v1939_v62 = vld [vmem:[#allocation5 + $0x240] sm:$0xf]  ;;  %v2267_v0 = vld [vmem:[#allocation5 + $0x24c] sm:$0xf0]  ;;  %v1812_v3 = vor.u32 %v2235_v58, %v1811_v57  ;;  %v2317_v54 = vld [vmem:[#allocation5 + $0x3e4] sm:$0xf] }
  0x3b   :  { %1237 = vmatpush.bf16.msrb.mxu3 %v2116_v32  ;;  %v2067_v1 = vld [vmem:[#allocation5 + $0x340] sm:$0xf]  ;;  %v2299_v2 = vld [vmem:[#allocation5 + $0x34c] sm:$0xf0]  ;;  %v1940_v8 = vor.u32 %v2267_v0, %v1939_v62  ;;  %v2213_v58 = vld [vmem:[#allocation5 + $0xa4] sm:$0xf] }
  0x3c   :  { %1209 = vmatpush.bf16.msrb.mxu1 %v1860_v22  ;;  %1196 = vmatpush.bf16.msrb.mxu0 %v1716_v33  ;;  %v1667_v4 = vld [vmem:[#allocation5 + $0x20] sm:$0xf]  ;;  %v2199_v5 = vld [vmem:[#allocation5 + $0x2c] sm:$0xf0]  ;;  %v2068_v9 = vor.u32 %v2299_v2, %v2067_v1  ;;  %v1896_v33 = vor.u32 %v2253_v28, %v1893_v29  ;;  %v1861_v62 = vld [vmem:[#allocation5 + $0x1b0] sm:$0xf0] }
  0x3d   :  { %v1795_v6 = vld [vmem:[#allocation5 + $0x120] sm:$0xf]  ;;  %v2231_v7 = vld [vmem:[#allocation5 + $0x12c] sm:$0xf0]  ;;  %v1668_v11 = vor.u32 %v2199_v5, %v1667_v4  ;;  %v2281_v0 = vld [vmem:[#allocation5 + $0x2c4] sm:$0xf] }
  0x3e   :  { %1224 = vmatpush.bf16.msrb.mxu2 %v1972_v45  ;;  %v1796_v12 = vor.u32 %v2231_v7, %v1795_v6  ;;  %v1651_v13 = vld [vmem:[#allocation5] sm:$0xf]  ;;  %v2195_v16 = vld [vmem:[#allocation5 + $0xc] sm:$0xf0]  ;;  %v2005_v1 = vld [vmem:[#allocation5 + $0x2d0] sm:$0xf0] }
  0x3f   :  { %1238 = vmatpush.bf16.msrb.mxu3 %v2100_v46  ;;  %v1779_v17 = vld [vmem:[#allocation5 + $0x100] sm:$0xf]  ;;  %v2227_v18 = vld [vmem:[#allocation5 + $0x10c] sm:$0xf0]  ;;  %v1652_v30 = vor.u32 %v2195_v16, %v1651_v13  ;;  %v2313_v2 = vld [vmem:[#allocation5 + $0x3c4] sm:$0xf] }
  0x40   :  { %1210 = vmatpush.bf16.msrb.mxu1 %v1844_v37  ;;  %1197 = vmatpush.bf16.msrb.mxu0 %v1700_v48  ;;  %v1780_v31 = vor.u32 %v2227_v18, %v1779_v17  ;;  %v1923_v34 = vld [vmem:[#allocation5 + $0x220] sm:$0xf]  ;;  %v2263_v35 = vld [vmem:[#allocation5 + $0x22c] sm:$0xf0]  ;;  %v2133_v4 = vld [vmem:[#allocation5 + $0x3d0] sm:$0xf0] }
  0x41   :  { %v2051_v36 = vld [vmem:[#allocation5 + $0x320] sm:$0xf]  ;;  %v1924_v37 = vor.u32 %v2263_v35, %v1923_v34  ;;  %v2295_v38 = vld [vmem:[#allocation5 + $0x32c] sm:$0xf0]  ;;  %v2136_v5 = vor.u32 %v2313_v2, %v2133_v4  ;;  %v2209_v6 = vld [vmem:[#allocation5 + $0x84] sm:$0xf] }
  0x42   :  { %1225 = vmatpush.bf16.msrb.mxu2 %v1956_v60  ;;  %v2052_v39 = vor.u32 %v2295_v38, %v2051_v36  ;;  %v1907_v45 = vld [vmem:[#allocation5 + $0x200] sm:$0xf]  ;;  %v2259_v46 = vld [vmem:[#allocation5 + $0x20c] sm:$0xf0]  ;;  %v1717_v7 = vld [vmem:[#allocation5 + $0x90] sm:$0xf0] }
  0x43   :  { %1239 = vmatpush.bf16.msrb.mxu3 %v2084_v61  ;;  %v1908_v48 = vor.u32 %v2259_v46, %v1907_v45  ;;  %v2035_v49 = vld [vmem:[#allocation5 + $0x300] sm:$0xf]  ;;  %v2291_v50 = vld [vmem:[#allocation5 + $0x30c] sm:$0xf0]  ;;  %v2245_v61 = vld [vmem:[#allocation5 + $0x1a4] sm:$0xf] }
  0x44   :  { %1211 = vmatpush.bf16.msrb.mxu1 %v1828_v52  ;;  %1198 = vmatpush.bf16.msrb.mxu0 %v1684_v63  ;;  %v2036_v52 = vor.u32 %v2291_v50, %v2035_v49  ;;  %v1864_v63 = vor.u32 %v2245_v61, %v1861_v62  ;;  %v1989_v13 = vld [vmem:[#allocation5 + $0x2b0] sm:$0xf0]  ;;  %v2205_v18 = vld [vmem:[#allocation5 + $0x64] sm:$0xf] }
  0x45   :  { %v2117_v16 = vld [vmem:[#allocation5 + $0x3b0] sm:$0xf0]  ;;  %v2269_v36 = vld [vmem:[#allocation5 + $0x264] sm:$0xf] }
  0x46   :  { %1226 = vmatpush.bf16.msrb.mxu2 %v1940_v8  ;;  %v2241_v8 = vld [vmem:[#allocation5 + $0x184] sm:$0xf]  ;;  %v2101_v29 = vld [vmem:[#allocation5 + $0x390] sm:$0xf0] }
  0x47   :  { %1240 = vmatpush.bf16.msrb.mxu3 %v2068_v9  ;;  %v1720_v9 = vor.u32 %v2209_v6, %v1717_v7  ;;  %v1813_v34 = vld [vmem:[#allocation5 + $0x150] sm:$0xf0]  ;;  %v2301_v38 = vld [vmem:[#allocation5 + $0x364] sm:$0xf] }
  0x48   :  { %1212 = vmatpush.bf16.msrb.mxu1 %v1812_v3  ;;  %1199 = vmatpush.bf16.msrb.mxu0 %v1668_v11  ;;  %v2008_v3 = vor.u32 %v2281_v0, %v2005_v1  ;;  %v2229_v44 = vld [vmem:[#allocation5 + $0x124] sm:$0xf]  ;;  %v1797_v46 = vld [vmem:[#allocation5 + $0x130] sm:$0xf0] }
  0x49   :  { %v1941_v49 = vld [vmem:[#allocation5 + $0x250] sm:$0xf0]  ;;  %v2297_v50 = vld [vmem:[#allocation5 + $0x344] sm:$0xf] }
  0x4a   :  { %1227 = vmatpush.bf16.msrb.mxu2 %v1924_v37  ;;  %v1957_v37 = vld [vmem:[#allocation5 + $0x270] sm:$0xf0]  ;;  %v2293_v1 = vld [vmem:[#allocation5 + $0x324] sm:$0xf] }
  0x4b   :  { %1241 = vmatpush.bf16.msrb.mxu3 %v2052_v39  ;;  %v1960_v39 = vor.u32 %v2269_v36, %v1957_v37  ;;  %v1925_v0 = vld [vmem:[#allocation5 + $0x230] sm:$0xf0] }
  0x4c   :  { %1213 = vmatpush.bf16.msrb.mxu1 %v1796_v12  ;;  %1200 = vmatpush.bf16.msrb.mxu0 %v1652_v30  ;;  %v2277_v12 = vld [vmem:[#allocation5 + $0x2a4] sm:$0xf] }
  0x4d   :  { %v2201_v30 = vld [vmem:[#allocation5 + $0x44] sm:$0xf] }
  0x4e   :  { %1228 = vmatpush.bf16.msrb.mxu2 %v1908_v48  ;;  %v2265_v48 = vld [vmem:[#allocation5 + $0x244] sm:$0xf] }
  0x4f   :  { %1242 = vmatpush.bf16.msrb.mxu3 %v2036_v52  ;;  %v1944_v52 = vor.u32 %v2265_v48, %v1941_v49 }
  0x50   :  { %1214 = vmatpush.bf16.msrb.mxu1 %v1780_v31  ;;  %v1685_v31 = vld [vmem:[#allocation5 + $0x50] sm:$0xf0] }
  0x6e   :  { %v91_v41 = vpop.permute.xlu2 %90 }
  0x76   :  { %v96_v10 = vpop.permute.xlu2 %95 }
  0x87   :  { %v2505_v26 = vpop.permute.xlu1 %101  ;;  %v2507_v27 = vpop.permute.xlu0 %79 }
  0x88   :  { %vm84_vm0 = vcmp.eq.s32.totalorder %v77_v59, %v2507_v27  ;;  %vm106_vm2 = vcmp.eq.s32.totalorder %v77_v59, %v2505_v26  ;;  %v1765_v27 = vld [vmem:[#allocation5 + $0xf0] sm:$0xf0] }
  0x89   :  { %v98_v19 = vsel %vm84_vm0, %v91_v41, 0.0  ;;  %v1768_v32 = vor.u32 %v2221_v23, %v1765_v27  ;;  %v1749_v41 = vld [vmem:[#allocation5 + $0xd0] sm:$0xf0]  ;;  %v2305_v27 = vld [vmem:[#allocation5 + $0x384] sm:$0xf] }
  0x8a   :  { %v1752_v43 = vor.u32 %v2217_v40, %v1749_v41  ;;  %v2085_v40 = vld [vmem:[#allocation5 + $0x370] sm:$0xf0] }
  0x8b   :  { %v2088_v41 = vor.u32 %v2301_v38, %v2085_v40 }
  0x8f   :  { %v105_v55 = vpop.permute.xlu1 %104  ;;  %v83_v56 = vpop.permute.xlu0 %82 }
  0x90   :  { %vm85_vm1 = vcmp.eq.s32.totalorder %v77_v59, %v83_v56  ;;  %vm107_vm3 = vcmp.eq.s32.totalorder %v77_v59, %v105_v55  ;;  %v2149_v55 = vld [vmem:[#allocation5 + $0x3f0] sm:$0xf0]  ;;  %v2024_v56 = vor.u32 %v2285_v51, %v2021_v53  ;;  %v2514_v51 = vld [vmem:[%s2579_s2] sm:$0xf] }
  0x91   :  { %v99_v20 = vsel %vm85_vm1, %v96_v10, 0.0  ;;  %v2152_v57 = vor.u32 %v2317_v54, %v2149_v55  ;;  %v1733_v59 = vld [vmem:[#allocation5 + $0xb0] sm:$0xf0]  ;;  %v2193_v55 = vld [vmem:[#allocation5 + $0x4] sm:$0xf]  ;;  %v158_v61 = vperm.slane %v2514_v51, 1 }
  0x92   :  { %v1736_v60 = vor.u32 %v2213_v58, %v1733_v59  ;;  %v1845_v10 = vld [vmem:[#allocation5 + $0x190] sm:$0xf0] }
  0x93   :  { %v1848_v11 = vor.u32 %v2241_v8, %v1845_v10  ;;  %v2069_v53 = vld [vmem:[#allocation5 + $0x350] sm:$0xf0] }
  0x94   :  { %v2072_v54 = vor.u32 %v2297_v50, %v2069_v53  ;;  %v1781_v59 = vld [vmem:[#allocation5 + $0x110] sm:$0xf0] }
  0x95   :  { %v1909_v10 = vld [vmem:[#allocation5 + $0x210] sm:$0xf0] }
  0x97   :  { %v116_v14 = vpop.permute.xlu1 %115  ;;  %v111_v15 = vpop.permute.xlu0 %110 }
  0x98   :  { %v119_v21 = vsel %vm107_vm3, %v116_v14, 0.0  ;;  %v118_v22 = vsel %vm106_vm2, %v111_v15, 0.0  ;;  %v2309_v14 = vld [vmem:[#allocation5 + $0x3a4] sm:$0xf]  ;;  %v1992_v15 = vor.u32 %v2277_v12, %v1989_v13  ;;  %v2037_v13 = vld [vmem:[#allocation5 + $0x310] sm:$0xf0] }
  0x99   :  { %v121_v24 = vadd.f32 %v119_v21, %v99_v20  ;;  %v120_v25 = vadd.f32 %v118_v22, %v98_v19  ;;  %v2120_v17 = vor.u32 %v2309_v14, %v2117_v16  ;;  %v1701_v19 = vld [vmem:[#allocation5 + $0x70] sm:$0xf0]  ;;  %v2237_v20 = vld [vmem:[#allocation5 + $0x164] sm:$0xf]  ;;  %v159_v16 = vperm.slane %v2514_v51, 2 }
  0x9a   :  { %v1704_v21 = vor.u32 %v2205_v18, %v1701_v19  ;;  %v1829_v22 = vld [vmem:[#allocation5 + $0x170] sm:$0xf0]  ;;  %v2289_v12 = vld [vmem:[#allocation5 + $0x304] sm:$0xf] }
  0x9b   :  { %v122_v26 = vpack.c.bf16 %v121_v24, %v120_v25  ;;  %v1832_v23 = vor.u32 %v2237_v20, %v1829_v22  ;;  %v2273_v24 = vld [vmem:[#allocation5 + $0x284] sm:$0xf]  ;;  %v1973_v25 = vld [vmem:[#allocation5 + $0x290] sm:$0xf0]  ;;  %v2040_v14 = vor.u32 %v2289_v12, %v2037_v13  ;;  %v2288_v13 = vld [vmem:[#allocation5 + $0x2f4] sm:$0xf0] }
  0x9c   :  { %v1976_v28 = vor.u32 %v2273_v24, %v1973_v25 }
  0x9d   :  { %333 = vmatmul.bf16.vlgmr.msra.gmra.mxu0 %v122_v26  ;;  %347 = vmatmul.bf16.vlgmr.msra.gmra.mxu1 %v122_v26 }
  0x9e   :  { %361 = vmatmul.bf16.vlgmr.msra.gmra.mxu2 %v122_v26  ;;  %375 = vmatmul.bf16.vlgmr.msra.gmra.mxu3 %v122_v26  ;;  %v2104_v26 = vor.u32 %v2305_v27, %v2101_v29 }
  0x9f   :  { %1249 = vmatpush.bf16.msra.mxu0 %v1768_v32  ;;  %1263 = vmatpush.bf16.msra.mxu1 %v1896_v33  ;;  %v2233_v32 = vld [vmem:[#allocation5 + $0x144] sm:$0xf]  ;;  %v1688_v33 = vor.u32 %v2201_v30, %v1685_v31 }
  0xa0   :  { %1277 = vmatpush.bf16.msra.mxu2 %v2024_v56  ;;  %1291 = vmatpush.bf16.msra.mxu3 %v2152_v57  ;;  %v1816_v35 = vor.u32 %v2233_v32, %v1813_v34  ;;  %v1653_v56 = vld [vmem:[#allocation5 + $0x10] sm:$0xf0]  ;;  %v2225_v57 = vld [vmem:[#allocation5 + $0x104] sm:$0xf] }
  0xa1   :  { %v1656_v58 = vor.u32 %v2193_v55, %v1653_v56  ;;  %v1784_v62 = vor.u32 %v2225_v57, %v1781_v59  ;;  %v1899_v55 = vld [vmem:[#allocation5 + $0x1e8] sm:$0xf]  ;;  %v2256_v56 = vld [vmem:[#allocation5 + $0x1f4] sm:$0xf0] }
  0xa3   :  { %1250 = vmatpush.bf16.msra.mxu0 %v1752_v43  ;;  %1264 = vmatpush.bf16.msra.mxu1 %v1880_v47  ;;  %v1669_v43 = vld [vmem:[#allocation5 + $0x30] sm:$0xf0]  ;;  %v1800_v47 = vor.u32 %v2229_v44, %v1797_v46 }
  0xa4   :  { %1278 = vmatpush.bf16.msra.mxu2 %v2008_v3  ;;  %1292 = vmatpush.bf16.msra.mxu3 %v2136_v5  ;;  %v1672_v45 = vor.u32 %v2197_v42, %v1669_v43  ;;  %v2053_v3 = vld [vmem:[#allocation5 + $0x330] sm:$0xf0] }
  0xa5   :  { %v2056_v4 = vor.u32 %v2293_v1, %v2053_v3  ;;  %v1900_v3 = vor.u32 %v2256_v56, %v1899_v55  ;;  %v1979_v55 = vld [vmem:[#allocation5 + $0x288] sm:$0xf]  ;;  %v2276_v56 = vld [vmem:[#allocation5 + $0x294] sm:$0xf0] }
  0xa7   :  { %1251 = vmatpush.bf16.msra.mxu0 %v1736_v60  ;;  %1265 = vmatpush.bf16.msra.mxu1 %v1864_v63  ;;  %v157_v60 = vperm.slane %v2514_v51, 0  ;;  %v2261_v63 = vld [vmem:[#allocation5 + $0x224] sm:$0xf] }
  0xa8   :  { %1279 = vmatpush.bf16.msra.mxu2 %v1992_v15  ;;  %1293 = vmatpush.bf16.msra.mxu3 %v2120_v17  ;;  %v1928_v2 = vor.u32 %v2261_v63, %v1925_v0  ;;  %v160_v17 = vperm.slane %v2514_v51, 3  ;;  %v1771_v51 = vld [vmem:[#allocation5 + $0xe8] sm:$0xf] }
  0xab   :  { %1252 = vmatpush.bf16.msra.mxu0 %v1720_v9  ;;  %1266 = vmatpush.bf16.msra.mxu1 %v1848_v11  ;;  %v2257_v9 = vld [vmem:[#allocation5 + $0x204] sm:$0xf] }
  0xac   :  { %1280 = vmatpush.bf16.msra.mxu2 %v1976_v28  ;;  %1294 = vmatpush.bf16.msra.mxu3 %v2104_v26  ;;  %v1912_v11 = vor.u32 %v2257_v9, %v1909_v10 }
  0xaf   :  { %1253 = vmatpush.bf16.msra.mxu0 %v1704_v21  ;;  %1267 = vmatpush.bf16.msra.mxu1 %v1832_v23 }
  0xb0   :  { %1281 = vmatpush.bf16.msra.mxu2 %v1960_v39  ;;  %1295 = vmatpush.bf16.msra.mxu3 %v2088_v41 }
  0xb3   :  { %1254 = vmatpush.bf16.msra.mxu0 %v1688_v33  ;;  %1268 = vmatpush.bf16.msra.mxu1 %v1816_v35 }
  0xb4   :  { %1282 = vmatpush.bf16.msra.mxu2 %v1944_v52  ;;  %1296 = vmatpush.bf16.msra.mxu3 %v2072_v54  ;;  %v2224_v52 = vld [vmem:[#allocation5 + $0xf4] sm:$0xf0] }
  0xb7   :  { %1255 = vmatpush.bf16.msra.mxu0 %v1672_v45  ;;  %1269 = vmatpush.bf16.msra.mxu1 %v1800_v47 }
  0xb8   :  { %1283 = vmatpush.bf16.msra.mxu2 %v1928_v2  ;;  %1297 = vmatpush.bf16.msra.mxu3 %v2056_v4  ;;  %v1755_v4 = vld [vmem:[#allocation5 + $0xc8] sm:$0xf] }
  0xbb   :  { %1256 = vmatpush.bf16.msra.mxu0 %v1656_v58  ;;  %1270 = vmatpush.bf16.msra.mxu1 %v1784_v62  ;;  %v1772_v62 = vor.u32 %v2224_v52, %v1771_v51  ;;  %v1835_v52 = vld [vmem:[#allocation5 + $0x168] sm:$0xf] }
  0xbc   :  { %1284 = vmatpush.bf16.msra.mxu2 %v1912_v11  ;;  %1298 = vmatpush.bf16.msra.mxu3 %v2040_v14  ;;  %v1883_v11 = vld [vmem:[#allocation5 + $0x1c8] sm:$0xf] }
 0x11a   :  { %v334_v5 = vpop.f32.mrf.mxu0  ;;  %v348_v6 = vpop.f32.mrf.mxu1 }
 0x11b   :  { %v335_v7 = vadd.f32 %v334_v5, %v157_v60  ;;  %v2518_v8 = vadd.f32 %v348_v6, %v158_v61  ;;  %v2220_v5 = vld [vmem:[#allocation5 + $0xd4] sm:$0xf0] }
 0x11d   :  { %v381_v15 = vmul.f32 0.5, %v335_v7  ;;  %v382_v18 = vmul.f32 0.5, %v2518_v8 }
 0x11f   :  { %2340 = vtanh.f32 %v381_v15  ;;  %v1756_v15 = vor.u32 %v2220_v5, %v1755_v4  ;;  %v1963_v4 = vld [vmem:[#allocation5 + $0x268] sm:$0xf]  ;;  %v2272_v5 = vld [vmem:[#allocation5 + $0x274] sm:$0xf0] }
 0x120   :  { %2342 = vtanh.f32 %v382_v18 }
 0x121   :  { %v362_v19 = vpop.f32.mrf.mxu2  ;;  %v376_v20 = vpop.f32.mrf.mxu3 }
 0x122   :  { %v2523_v21 = vadd.f32 %v362_v19, %v159_v16  ;;  %v2525_v22 = vadd.f32 %v376_v20, %v160_v17  ;;  %v336_v23 = vpop.f32.mrf.mxu0  ;;  %v350_v24 = vpop.f32.mrf.mxu1 }
 0x123   :  { %v337_v25 = vadd.f32 %v336_v23, %v157_v60  ;;  %v351_v27 = vadd.f32 %v350_v24, %v158_v61  ;;  %v1739_v23 = vld [vmem:[#allocation5 + $0xa8] sm:$0xf]  ;;  %v2216_v24 = vld [vmem:[#allocation5 + $0xb4] sm:$0xf0] }
 0x124   :  { %v383_v28 = vmul.f32 0.5, %v2523_v21  ;;  %v384_v29 = vmul.f32 0.5, %v2525_v22 }
 0x125   :  { %v385_v26 = vmul.f32 0.5, %v337_v25  ;;  %v386_v30 = vmul.f32 0.5, %v351_v27  ;;  %v2341_v31 = vpop.eup %2340 }
 0x126   :  { %2344 = vtanh.f32 %v383_v28  ;;  %v2343_v32 = vpop.eup %2342  ;;  %v397_v37 = vadd.f32 1.0, %v2341_v31 }
 0x127   :  { %2346 = vtanh.f32 %v384_v29  ;;  %v398_v39 = vadd.f32 1.0, %v2343_v32  ;;  %v1867_v29 = vld [vmem:[#allocation5 + $0x1a8] sm:$0xf] }
 0x128   :  { %2348 = vtanh.f32 %v385_v26  ;;  %v405_v45 = vmul.f32 0.5, %v397_v37  ;;  %v2248_v26 = vld [vmem:[#allocation5 + $0x1b4] sm:$0xf0]  ;;  %v2011_v32 = vld [vmem:[#allocation5 + $0x2c8] sm:$0xf] }
 0x129   :  { %2350 = vtanh.f32 %v386_v30  ;;  %v364_v33 = vpop.f32.mrf.mxu2  ;;  %v378_v34 = vpop.f32.mrf.mxu3  ;;  %v406_v47 = vmul.f32 0.5, %v398_v39  ;;  %v2316_v37 = vld [vmem:[#allocation5 + $0x3d4] sm:$0xf0] }
 0x12a   :  { %v365_v35 = vadd.f32 %v364_v33, %v159_v16  ;;  %v379_v36 = vadd.f32 %v378_v34, %v160_v17  ;;  %v413_v57 = vmul.f32 %v405_v45, %v335_v7  ;;  %v2252_v7 = vld [vmem:[#allocation5 + $0x1d4] sm:$0xf0]  ;;  %v2155_v16 = vld [vmem:[#allocation5 + $0x3e8] sm:$0xf] }
 0x12b   :  { %v414_v60 = vmul.f32 %v406_v47, %v2518_v8  ;;  %v2027_v8 = vld [vmem:[#allocation5 + $0x2e8] sm:$0xf]  ;;  %v2320_v17 = vld [vmem:[#allocation5 + $0x3f4] sm:$0xf0]  ;;  %v1884_v20 = vor.u32 %v2252_v7, %v1883_v11 }
 0x12c   :  { %v2345_v38 = vpop.eup %2344  ;;  %v387_v40 = vmul.f32 0.5, %v365_v35  ;;  %v388_v41 = vmul.f32 0.5, %v379_v36  ;;  %v2028_v28 = vor.u32 %v2288_v13, %v2027_v8  ;;  %v2156_v31 = vor.u32 %v2320_v17, %v2155_v16  ;;  %v2284_v33 = vld [vmem:[#allocation5 + $0x2d4] sm:$0xf0]  ;;  %v1947_v17 = vld [vmem:[#allocation5 + $0x248] sm:$0xf] }
 0x12d   :  { %v2347_v42 = vpop.eup %2346  ;;  %v399_v49 = vadd.f32 1.0, %v2345_v38  ;;  %v1868_v38 = vor.u32 %v2248_v26, %v1867_v29  ;;  %v2012_v39 = vor.u32 %v2284_v33, %v2011_v32  ;;  %v2312_v47 = vld [vmem:[#allocation5 + $0x3b4] sm:$0xf0]  ;;  %v1964_v13 = vor.u32 %v2272_v5, %v1963_v4  ;;  %v1773_v32 = vld [vmem:[#allocation5 + $0xf8] sm:$0xf0] }
 0x12e   :  { %v2349_v43 = vpop.eup %2348  ;;  %2352 = vtanh.f32 %v387_v40  ;;  %v400_v53 = vadd.f32 1.0, %v2347_v42  ;;  %v1851_v40 = vld [vmem:[#allocation5 + $0x188] sm:$0xf]  ;;  %v2304_v11 = vld [vmem:[#allocation5 + $0x374] sm:$0xf0] }
 0x12f   :  { %v2351_v44 = vpop.eup %2350  ;;  %v401_v46 = vadd.f32 1.0, %v2349_v43  ;;  %2354 = vtanh.f32 %v388_v41  ;;  %v407_v0 = vmul.f32 0.5, %v399_v49  ;;  %v2244_v41 = vld [vmem:[#allocation5 + $0x194] sm:$0xf0]  ;;  %v1995_v43 = vld [vmem:[#allocation5 + $0x2a8] sm:$0xf] }
 0x130   :  { %v402_v48 = vadd.f32 1.0, %v2351_v44  ;;  %v408_v6 = vmul.f32 0.5, %v400_v53  ;;  %v2280_v44 = vld [vmem:[#allocation5 + $0x2b4] sm:$0xf0]  ;;  %v1707_v49 = vld [vmem:[#allocation5 + $0x68] sm:$0xf] }
 0x131   :  { %v409_v50 = vmul.f32 0.5, %v401_v46  ;;  %v415_v18 = vmul.f32 %v407_v0, %v2523_v21  ;;  %v1740_v21 = vor.u32 %v2216_v24, %v1739_v23  ;;  %v2123_v46 = vld [vmem:[#allocation5 + $0x3a8] sm:$0xf]  ;;  %v1996_v51 = vor.u32 %v2280_v44, %v1995_v43  ;;  %v2240_v53 = vld [vmem:[#allocation5 + $0x174] sm:$0xf0] }
 0x132   :  { %v410_v54 = vmul.f32 0.5, %v402_v48  ;;  %v1852_v48 = vor.u32 %v2244_v41, %v1851_v40  ;;  %v1819_v0 = vld [vmem:[#allocation5 + $0x148] sm:$0xf]  ;;  %v2200_v8 = vld [vmem:[#allocation5 + $0x34] sm:$0xf0] }
 0x133   :  { %v417_v58 = vmul.f32 %v409_v50, %v337_v25  ;;  %v416_v25 = vmul.f32 %v408_v6, %v2525_v22  ;;  %v1723_v22 = vld [vmem:[#allocation5 + $0x88] sm:$0xf]  ;;  %v2208_v50 = vld [vmem:[#allocation5 + $0x74] sm:$0xf0]  ;;  %v2254_v33 = vld [vmem:[#allocation5 + $0x1ec] sm:$0xf] }
 0x134   :  { %v2353_v59 = vpop.eup %2352  ;;  %v418_v61 = vmul.f32 %v410_v54, %v351_v27  ;;  %v2124_v54 = vor.u32 %v2312_v47, %v2123_v46  ;;  %v2300_v23 = vld [vmem:[#allocation5 + $0x354] sm:$0xf0]  ;;  %v1659_v24 = vld [vmem:[#allocation5 + $0x8] sm:$0xf]  ;;  %v2250_v46 = vld [vmem:[#allocation5 + $0x1cc] sm:$0xf] }
 0x135   :  { %v2355_v63 = vpop.eup %2354  ;;  %v2530_v1 = vpack.c.bf16 %v417_v58, %v413_v57  ;;  %v403_v2 = vadd.f32 1.0, %v2353_v59  ;;  %v1708_v57 = vor.u32 %v2208_v50, %v1707_v49  ;;  %v2107_v58 = vld [vmem:[#allocation5 + $0x388] sm:$0xf]  ;;  %v2308_v59 = vld [vmem:[#allocation5 + $0x394] sm:$0xf0] }
 0x136   :  { %v2532_v9 = vpack.c.bf16 %v418_v61, %v414_v60  ;;  %v404_v10 = vadd.f32 1.0, %v2355_v63  ;;  %v1836_v60 = vor.u32 %v2240_v53, %v1835_v52  ;;  %v1691_v61 = vld [vmem:[#allocation5 + $0x48] sm:$0xf]  ;;  %v1980_v63 = vor.u32 %v2276_v56, %v1979_v55  ;;  %v2228_v29 = vld [vmem:[#allocation5 + $0x114] sm:$0xf0] }
 0x137   :  { %v411_v12 = vmul.f32 0.5, %v403_v2  ;;  %1201 = vmatmul.bf16.vlgmr.msrb.gmra.mxu0 %v2530_v1  ;;  %v2236_v2 = vld [vmem:[#allocation5 + $0x154] sm:$0xf0]  ;;  %v1885_v47 = vld [vmem:[#allocation5 + $0x1d8] sm:$0xf0] }
 0x138   :  { %v412_v14 = vmul.f32 0.5, %v404_v10  ;;  %1215 = vmatmul.bf16.vlgmr.msrb.gmra.mxu1 %v2532_v9  ;;  %1305 = vmatpush.bf16.msrb.mxu0 %v1772_v62  ;;  %v2204_v62 = vld [vmem:[#allocation5 + $0x54] sm:$0xf0]  ;;  %v2091_v10 = vld [vmem:[#allocation5 + $0x368] sm:$0xf]  ;;  %v1820_v7 = vor.u32 %v2236_v2, %v1819_v0 }
 0x139   :  { %v419_v19 = vmul.f32 %v411_v12, %v365_v35  ;;  %1319 = vmatpush.bf16.msrb.mxu1 %v1900_v3  ;;  %v2139_v35 = vld [vmem:[#allocation5 + $0x3c8] sm:$0xf]  ;;  %v2108_v3 = vor.u32 %v2308_v59, %v2107_v58  ;;  %v1692_v6 = vor.u32 %v2204_v62, %v1691_v61  ;;  %v2092_v16 = vor.u32 %v2304_v11, %v2091_v10  ;;  %v2260_v50 = vld [vmem:[#allocation5 + $0x214] sm:$0xf0]  ;;  %v2286_v53 = vld [vmem:[#allocation5 + $0x2ec] sm:$0xf] }
 0x13a   :  { %v420_v27 = vmul.f32 %v412_v14, %v379_v36  ;;  %v2212_v36 = vld [vmem:[#allocation5 + $0x94] sm:$0xf0]  ;;  %v2140_v42 = vor.u32 %v2316_v37, %v2139_v35  ;;  %v1675_v12 = vld [vmem:[#allocation5 + $0x28] sm:$0xf]  ;;  %v1901_v35 = vld [vmem:[#allocation5 + $0x1f8] sm:$0xf0]  ;;  %v1888_v58 = vor.u32 %v2250_v46, %v1885_v47 }
 0x13b   :  { %v2538_v30 = vpack.c.bf16 %v419_v19, %v415_v18  ;;  %v1724_v45 = vor.u32 %v2212_v36, %v1723_v22  ;;  %v1803_v14 = vld [vmem:[#allocation5 + $0x128] sm:$0xf]  ;;  %v2268_v18 = vld [vmem:[#allocation5 + $0x254] sm:$0xf0]  ;;  %v1676_v19 = vor.u32 %v2200_v8, %v1675_v12  ;;  %v1904_v43 = vor.u32 %v2254_v33, %v1901_v35  ;;  %v2318_v56 = vld [vmem:[#allocation5 + $0x3ec] sm:$0xf] }
 0x13c   :  { %v2540_v34 = vpack.c.bf16 %v420_v27, %v416_v25  ;;  %1306 = vmatpush.bf16.msrb.mxu0 %v1756_v15  ;;  %v2232_v15 = vld [vmem:[#allocation5 + $0x134] sm:$0xf0]  ;;  %v1948_v26 = vor.u32 %v2268_v18, %v1947_v17  ;;  %v1931_v37 = vld [vmem:[#allocation5 + $0x228] sm:$0xf]  ;;  %v1741_v61 = vld [vmem:[#allocation5 + $0xb8] sm:$0xf0] }
 0x13d   :  { %1320 = vmatpush.bf16.msrb.mxu1 %v1884_v20  ;;  %1229 = vmatmul.bf16.vlgmr.msrb.gmra.mxu2 %v2538_v30  ;;  %v2075_v20 = vld [vmem:[#allocation5 + $0x348] sm:$0xf]  ;;  %v1804_v25 = vor.u32 %v2232_v15, %v1803_v14  ;;  %v2196_v27 = vld [vmem:[#allocation5 + $0x14] sm:$0xf0]  ;;  %v2246_v0 = vld [vmem:[#allocation5 + $0x1ac] sm:$0xf] }
 0x13e   :  { %1243 = vmatmul.bf16.vlgmr.msrb.gmra.mxu3 %v2540_v34  ;;  %1333 = vmatpush.bf16.msrb.mxu2 %v2028_v28  ;;  %v1787_v28 = vld [vmem:[#allocation5 + $0x108] sm:$0xf]  ;;  %v1660_v22 = vor.u32 %v2196_v27, %v1659_v24  ;;  %v2292_v52 = vld [vmem:[#allocation5 + $0x314] sm:$0xf0]  ;;  %v1869_v2 = vld [vmem:[#allocation5 + $0x1b8] sm:$0xf0] }
 0x13f   :  { %1347 = vmatpush.bf16.msrb.mxu3 %v2156_v31  ;;  %v2222_v31 = vld [vmem:[#allocation5 + $0xec] sm:$0xf]  ;;  %v2059_v36 = vld [vmem:[#allocation5 + $0x328] sm:$0xf]  ;;  %v1788_v40 = vor.u32 %v2228_v29, %v1787_v28  ;;  %v2013_v5 = vld [vmem:[#allocation5 + $0x2d8] sm:$0xf0] }
 0x140   :  { %1307 = vmatpush.bf16.msrb.mxu0 %v1740_v21  ;;  %v2076_v21 = vor.u32 %v2300_v23, %v2075_v20  ;;  %v1776_v41 = vor.u32 %v2222_v31, %v1773_v32  ;;  %v1915_v49 = vld [vmem:[#allocation5 + $0x208] sm:$0xf]  ;;  %v2282_v4 = vld [vmem:[#allocation5 + $0x2cc] sm:$0xf]  ;;  %v2141_v11 = vld [vmem:[#allocation5 + $0x3d8] sm:$0xf0] }
 0x141   :  { %1321 = vmatpush.bf16.msrb.mxu1 %v1868_v38  ;;  %v2264_v38 = vld [vmem:[#allocation5 + $0x234] sm:$0xf0]  ;;  %v1916_v59 = vor.u32 %v2260_v50, %v1915_v49  ;;  %v2314_v10 = vld [vmem:[#allocation5 + $0x3cc] sm:$0xf]  ;;  %v1725_v8 = vld [vmem:[#allocation5 + $0x98] sm:$0xf0] }
 0x142   :  { %1334 = vmatpush.bf16.msrb.mxu2 %v2012_v39  ;;  %v2296_v39 = vld [vmem:[#allocation5 + $0x334] sm:$0xf0]  ;;  %v1932_v44 = vor.u32 %v2264_v38, %v1931_v37  ;;  %v2210_v12 = vld [vmem:[#allocation5 + $0x8c] sm:$0xf]  ;;  %v1853_v15 = vld [vmem:[#allocation5 + $0x198] sm:$0xf0] }
 0x143   :  { %1348 = vmatpush.bf16.msrb.mxu3 %v2140_v42  ;;  %v2218_v42 = vld [vmem:[#allocation5 + $0xcc] sm:$0xf]  ;;  %v1997_v18 = vld [vmem:[#allocation5 + $0x2b8] sm:$0xf0] }
 0x144   :  { %1308 = vmatpush.bf16.msrb.mxu0 %v1724_v45  ;;  %v1757_v45 = vld [vmem:[#allocation5 + $0xd8] sm:$0xf0]  ;;  %v2242_v14 = vld [vmem:[#allocation5 + $0x18c] sm:$0xf] }
 0x145   :  { %1322 = vmatpush.bf16.msrb.mxu1 %v1852_v48  ;;  %v2060_v48 = vor.u32 %v2296_v39, %v2059_v36  ;;  %v1760_v55 = vor.u32 %v2218_v42, %v1757_v45  ;;  %v2278_v17 = vld [vmem:[#allocation5 + $0x2ac] sm:$0xf]  ;;  %v2125_v23 = vld [vmem:[#allocation5 + $0x3b8] sm:$0xf0]  ;;  %v1856_v24 = vor.u32 %v2242_v14, %v1853_v15 }
 0x146   :  { %1335 = vmatpush.bf16.msrb.mxu2 %v1996_v51  ;;  %v2043_v51 = vld [vmem:[#allocation5 + $0x308] sm:$0xf]  ;;  %v2310_v20 = vld [vmem:[#allocation5 + $0x3ac] sm:$0xf]  ;;  %v1709_v27 = vld [vmem:[#allocation5 + $0x78] sm:$0xf0]  ;;  %v2000_v28 = vor.u32 %v2278_v17, %v1997_v18 }
 0x147   :  { %1349 = vmatpush.bf16.msrb.mxu3 %v2124_v54  ;;  %1257 = vmatmul.bf16.vlgmr.msra.gmra.mxu0 %v2530_v1  ;;  %v2029_v54 = vld [vmem:[#allocation5 + $0x2f8] sm:$0xf0]  ;;  %v2044_v62 = vor.u32 %v2292_v52, %v2043_v51  ;;  %v2238_v29 = vld [vmem:[#allocation5 + $0x16c] sm:$0xf]  ;;  %v2128_v31 = vor.u32 %v2310_v20, %v2125_v23 }
 0x148   :  { %1271 = vmatmul.bf16.vlgmr.msra.gmra.mxu1 %v2532_v9  ;;  %1309 = vmatpush.bf16.msrb.mxu0 %v1708_v57  ;;  %v2157_v57 = vld [vmem:[#allocation5 + $0x3f8] sm:$0xf0]  ;;  %v2274_v32 = vld [vmem:[#allocation5 + $0x28c] sm:$0xf] }
 0x149   :  { %1323 = vmatpush.bf16.msrb.mxu1 %v1836_v60  ;;  %v2214_v60 = vld [vmem:[#allocation5 + $0xac] sm:$0xf]  ;;  %v1981_v33 = vld [vmem:[#allocation5 + $0x298] sm:$0xf0] }
 0x14a   :  { %1336 = vmatpush.bf16.msrb.mxu2 %v1980_v63  ;;  %v2032_v63 = vor.u32 %v2286_v53, %v2029_v54  ;;  %v2306_v35 = vld [vmem:[#allocation5 + $0x38c] sm:$0xf]  ;;  %v2109_v37 = vld [vmem:[#allocation5 + $0x398] sm:$0xf0]  ;;  %v1984_v39 = vor.u32 %v2274_v32, %v1981_v33 }
 0x14b   :  { %1350 = vmatpush.bf16.msrb.mxu3 %v2108_v3  ;;  %v2160_v3 = vor.u32 %v2318_v56, %v2157_v57  ;;  %v1693_v36 = vld [vmem:[#allocation5 + $0x58] sm:$0xf0]  ;;  %v2112_v42 = vor.u32 %v2306_v35, %v2109_v37  ;;  %v2302_v46 = vld [vmem:[#allocation5 + $0x36c] sm:$0xf] }
 0x14c   :  { %1310 = vmatpush.bf16.msrb.mxu0 %v1692_v6  ;;  %v1744_v6 = vor.u32 %v2214_v60, %v1741_v61  ;;  %v2093_v47 = vld [vmem:[#allocation5 + $0x378] sm:$0xf0]  ;;  %v2198_v49 = vld [vmem:[#allocation5 + $0x2c] sm:$0xf] }
 0x14d   :  { %1324 = vmatpush.bf16.msrb.mxu1 %v1820_v7  ;;  %1285 = vmatmul.bf16.vlgmr.msra.gmra.mxu2 %v2538_v30  ;;  %v1872_v7 = vor.u32 %v2246_v0, %v1869_v2  ;;  %v1677_v50 = vld [vmem:[#allocation5 + $0x38] sm:$0xf0]  ;;  %v2230_v52 = vld [vmem:[#allocation5 + $0x12c] sm:$0xf]  ;;  %v2096_v54 = vor.u32 %v2302_v46, %v2093_v47 }
 0x14e   :  { %1299 = vmatmul.bf16.vlgmr.msra.gmra.mxu3 %v2540_v34  ;;  %1337 = vmatpush.bf16.msrb.mxu2 %v1964_v13  ;;  %v2016_v13 = vor.u32 %v2282_v4, %v2013_v5  ;;  %v1805_v53 = vld [vmem:[#allocation5 + $0x138] sm:$0xf0]  ;;  %v1680_v57 = vor.u32 %v2198_v49, %v1677_v50  ;;  %v2194_v61 = vld [vmem:[#allocation5 + $0xc] sm:$0xf] }
 0x14f   :  { %1351 = vmatpush.bf16.msrb.mxu3 %v2092_v16  ;;  %v2144_v16 = vor.u32 %v2314_v10, %v2141_v11  ;;  %v1949_v56 = vld [vmem:[#allocation5 + $0x258] sm:$0xf0]  ;;  %v1808_v60 = vor.u32 %v2230_v52, %v1805_v53  ;;  %v2226_v0 = vld [vmem:[#allocation5 + $0x10c] sm:$0xf] }
 0x150   :  { %1311 = vmatpush.bf16.msrb.mxu0 %v1676_v19  ;;  %v1728_v19 = vor.u32 %v2210_v12, %v1725_v8  ;;  %v1789_v2 = vld [vmem:[#allocation5 + $0x118] sm:$0xf0]  ;;  %v2262_v4 = vld [vmem:[#allocation5 + $0x22c] sm:$0xf] }
 0x151   :  { %1325 = vmatpush.bf16.msrb.mxu1 %v1804_v25  ;;  %v2206_v25 = vld [vmem:[#allocation5 + $0x6c] sm:$0xf]  ;;  %v1933_v5 = vld [vmem:[#allocation5 + $0x238] sm:$0xf0] }
 0x152   :  { %1338 = vmatpush.bf16.msrb.mxu2 %v1948_v26  ;;  %v1837_v26 = vld [vmem:[#allocation5 + $0x178] sm:$0xf0]  ;;  %v2294_v10 = vld [vmem:[#allocation5 + $0x32c] sm:$0xf]  ;;  %v1936_v12 = vor.u32 %v2262_v4, %v1933_v5 }
 0x153   :  { %1352 = vmatpush.bf16.msrb.mxu3 %v2076_v21  ;;  %v1712_v21 = vor.u32 %v2206_v25, %v1709_v27  ;;  %v1840_v38 = vor.u32 %v2238_v29, %v1837_v26  ;;  %v2061_v11 = vld [vmem:[#allocation5 + $0x338] sm:$0xf0]  ;;  %v2290_v15 = vld [vmem:[#allocation5 + $0x30c] sm:$0xf]  ;;  %v2559_v25 = vld [vmem:[%s2581_s4] sm:$0xf] }
 0x154   :  { %1312 = vmatpush.bf16.msrb.mxu0 %v1660_v22  ;;  %v2202_v22 = vld [vmem:[#allocation5 + $0x4c] sm:$0xf]  ;;  %v2064_v8 = vor.u32 %v2294_v10, %v2061_v11  ;;  %v1917_v14 = vld [vmem:[#allocation5 + $0x218] sm:$0xf0]  ;;  %v1420_v50 = vperm.slane %v2559_v25, 1  ;;  %s2455_s4 = smov [#allocation7]  }
 0x155   :  { %1326 = vmatpush.bf16.msrb.mxu1 %v1788_v40  ;;  %v2234_v40 = vld [vmem:[#allocation5 + $0x14c] sm:$0xf]  ;;  %v1696_v45 = vor.u32 %v2202_v22, %v1693_v36 }
 0x156   :  { %1339 = vmatpush.bf16.msrb.mxu2 %v1932_v44  ;;  %v1965_v44 = vld [vmem:[#allocation5 + $0x278] sm:$0xf0] }
 0x157   :  { %1353 = vmatpush.bf16.msrb.mxu3 %v2060_v48  ;;  %1313 = vmatmul.bf16.vlgmr.msrb.gmra.mxu0 %v2530_v1 }
 0x158   :  { %1361 = vmatpush.bf16.msra.mxu0 %v1776_v41  ;;  %1327 = vmatmul.bf16.vlgmr.msrb.gmra.mxu1 %v2532_v9  ;;  %v1821_v41 = vld [vmem:[#allocation5 + $0x158] sm:$0xf0] }
 0x159   :  { %1375 = vmatpush.bf16.msra.mxu1 %v1904_v43  ;;  %v2270_v43 = vld [vmem:[#allocation5 + $0x26c] sm:$0xf]  ;;  %v1824_v48 = vor.u32 %v2234_v40, %v1821_v41 }
 0x15a   :  { %1340 = vmatpush.bf16.msrb.mxu2 %v1916_v59  ;;  %v1968_v51 = vor.u32 %v2270_v43, %v1965_v44  ;;  %v2077_v59 = vld [vmem:[#allocation5 + $0x358] sm:$0xf0] }
 0x15b   :  { %1354 = vmatpush.bf16.msrb.mxu3 %v2044_v62  ;;  %v1661_v62 = vld [vmem:[#allocation5 + $0x18] sm:$0xf0] }
 0x15c   :  { %1362 = vmatpush.bf16.msra.mxu0 %v1760_v55  ;;  %v2266_v55 = vld [vmem:[#allocation5 + $0x24c] sm:$0xf] }
 0x15d   :  { %1376 = vmatpush.bf16.msra.mxu1 %v1888_v58  ;;  %1341 = vmatmul.bf16.vlgmr.msrb.gmra.mxu2 %v2538_v30  ;;  %v2298_v58 = vld [vmem:[#allocation5 + $0x34c] sm:$0xf] }
 0x15e   :  { %1389 = vmatpush.bf16.msra.mxu2 %v2032_v63  ;;  %1355 = vmatmul.bf16.vlgmr.msrb.gmra.mxu3 %v2540_v34  ;;  %v1952_v63 = vor.u32 %v2266_v55, %v1949_v56 }
 0x15f   :  { %1403 = vmatpush.bf16.msra.mxu3 %v2160_v3  ;;  %v2080_v3 = vor.u32 %v2298_v58, %v2077_v59 }
 0x160   :  { %1363 = vmatpush.bf16.msra.mxu0 %v1744_v6  ;;  %v1664_v6 = vor.u32 %v2194_v61, %v1661_v62 }
 0x161   :  { %1377 = vmatpush.bf16.msra.mxu1 %v1872_v7  ;;  %v1792_v7 = vor.u32 %v2226_v0, %v1789_v2 }
 0x162   :  { %1390 = vmatpush.bf16.msra.mxu2 %v2016_v13  ;;  %v2258_v13 = vld [vmem:[#allocation5 + $0x20c] sm:$0xf] }
 0x163   :  { %1404 = vmatpush.bf16.msra.mxu3 %v2144_v16  ;;  %v2045_v16 = vld [vmem:[#allocation5 + $0x318] sm:$0xf0]  ;;  %v1920_v17 = vor.u32 %v2258_v13, %v1917_v14 }
 0x164   :  { %1364 = vmatpush.bf16.msra.mxu0 %v1728_v19  ;;  %v2048_v18 = vor.u32 %v2290_v15, %v2045_v16  ;;  %v1421_v16 = vperm.slane %v2559_v25, 2 }
 0x165   :  { %1378 = vmatpush.bf16.msra.mxu1 %v1856_v24 }
 0x166   :  { %1391 = vmatpush.bf16.msra.mxu2 %v2000_v28 }
 0x167   :  { %1405 = vmatpush.bf16.msra.mxu3 %v2128_v31 }
 0x168   :  { %1365 = vmatpush.bf16.msra.mxu0 %v1712_v21 }
 0x169   :  { %1379 = vmatpush.bf16.msra.mxu1 %v1840_v38 }
 0x16a   :  { %1392 = vmatpush.bf16.msra.mxu2 %v1984_v39 }
 0x16b   :  { %1406 = vmatpush.bf16.msra.mxu3 %v2112_v42 }
 0x16c   :  { %1366 = vmatpush.bf16.msra.mxu0 %v1696_v45 }
 0x16d   :  { %1380 = vmatpush.bf16.msra.mxu1 %v1824_v48 }
 0x16e   :  { %1393 = vmatpush.bf16.msra.mxu2 %v1968_v51 }
 0x16f   :  { %1407 = vmatpush.bf16.msra.mxu3 %v2096_v54 }
 0x170   :  { %1367 = vmatpush.bf16.msra.mxu0 %v1680_v57 }
 0x171   :  { %1381 = vmatpush.bf16.msra.mxu1 %v1808_v60 }
 0x172   :  { %1394 = vmatpush.bf16.msra.mxu2 %v1952_v63 }
 0x173   :  { %1408 = vmatpush.bf16.msra.mxu3 %v2080_v3 }
 0x174   :  { %1368 = vmatpush.bf16.msra.mxu0 %v1664_v6 }
 0x175   :  { %1382 = vmatpush.bf16.msra.mxu1 %v1792_v7 }
 0x176   :  { %1395 = vmatpush.bf16.msra.mxu2 %v1936_v12 }
 0x177   :  { %1409 = vmatpush.bf16.msra.mxu3 %v2064_v8  ;;  %1369 = vmatmul.bf16.vlgmr.msra.gmra.mxu0 %v2530_v1 }
 0x178   :  { %1383 = vmatmul.bf16.vlgmr.msra.gmra.mxu1 %v2532_v9  ;;  %v2564_v9 = vld [vmem:[%s2582_s5] sm:$0xf]  ;;  %s1505_s5 = sshll.u32 %s2455_s4, 4  ;;  %s1506_s5 = int_to_ptr.vmem [resolvable:$true] %s1505_s5 }
 0x179   :  { %v1437_v26 = vperm.slane %v2564_v9, 0  ;;  %v1438_v53 = vperm.slane %v2564_v9, 1 }
 0x17a   :  { %1396 = vmatpush.bf16.msra.mxu2 %v1920_v17 }
 0x17b   :  { %1410 = vmatpush.bf16.msra.mxu3 %v2048_v18 }
 0x17d   :  { %1397 = vmatmul.bf16.vlgmr.msra.gmra.mxu2 %v2538_v30 }
 0x17e   :  { %1411 = vmatmul.bf16.vlgmr.msra.gmra.mxu3 %v2540_v34  ;;  %v1419_v34 = vperm.slane %v2559_v25, 0 }
 0x1b4   :  { %v1202_v19 = vpop.f32.mrf.mxu0 }
 0x1b5   :  { %v1216_v20 = vpop.f32.mrf.mxu1 }
 0x1b6   :  { %v1217_v27 = vadd.f32 %v1216_v20, %v1202_v19  ;;  %v1439_v19 = vperm.slane %v2564_v9, 2 }
 0x1bc   :  { %v1204_v23 = vpop.f32.mrf.mxu0 }
 0x1bd   :  { %v1218_v24 = vpop.f32.mrf.mxu1 }
 0x1be   :  { %v1219_v21 = vadd.f32 %v1218_v24, %v1204_v23 }
 0x1c0   :  { %v1230_v1 = vpop.f32.mrf.mxu2 }
 0x1c1   :  { %v1231_v28 = vadd.f32 %v1230_v1, %v1217_v27  ;;  %v1244_v30 = vpop.f32.mrf.mxu3 }
 0x1c3   :  { %v1245_v29 = vadd.f32 %v1244_v30, %v1231_v28 }
 0x1c4   :  { %v1258_v32 = vpop.f32.mrf.mxu0 }
 0x1c5   :  { %v1427_v31 = vmul.f32 %v1419_v34, %v1245_v29  ;;  %v1272_v33 = vpop.f32.mrf.mxu1 }
 0x1c6   :  { %v1273_v41 = vadd.f32 %v1272_v33, %v1258_v32 }
 0x1c7   :  { %v1445_v35 = vadd.f32 %v1437_v26, %v1427_v31 }
 0x1c8   :  { %v1232_v37 = vpop.f32.mrf.mxu2 }
 0x1c9   :  { %v1453_v38 = vmul.f32 0.5, %v1445_v35  ;;  %v1233_v22 = vadd.f32 %v1232_v37, %v1219_v21  ;;  %v1246_v36 = vpop.f32.mrf.mxu3 }
 0x1cb   :  { %2356 = vtanh.f32 %v1453_v38  ;;  %v1247_v39 = vadd.f32 %v1246_v36, %v1233_v22 }
 0x1cc   :  { %v1260_v43 = vpop.f32.mrf.mxu0 }
 0x1cd   :  { %v1431_v40 = vmul.f32 %v1419_v34, %v1247_v39  ;;  %v1274_v44 = vpop.f32.mrf.mxu1 }
 0x1ce   :  { %v1275_v57 = vadd.f32 %v1274_v44, %v1260_v43 }
 0x1cf   :  { %v1449_v42 = vadd.f32 %v1437_v26, %v1431_v40 }
 0x1d0   :  { %v1286_v45 = vpop.f32.mrf.mxu2 }
 0x1d1   :  { %v2357_v46 = vpop.eup %2356  ;;  %v1457_v47 = vmul.f32 0.5, %v1449_v42  ;;  %v1287_v48 = vadd.f32 %v1286_v45, %v1273_v41  ;;  %v1300_v49 = vpop.f32.mrf.mxu3 }
 0x1d2   :  { %v1469_v51 = vadd.f32 1.0, %v2357_v46 }
 0x1d3   :  { %2358 = vtanh.f32 %v1457_v47  ;;  %v1301_v52 = vadd.f32 %v1300_v49, %v1287_v48 }
 0x1d4   :  { %v1477_v54 = vmul.f32 0.5, %v1469_v51  ;;  %v1314_v2 = vpop.f32.mrf.mxu0 }
 0x1d5   :  { %v1428_v55 = vmul.f32 %v1420_v50, %v1301_v52  ;;  %v1328_v3 = vpop.f32.mrf.mxu1 }
 0x1d6   :  { %v1485_v56 = vmul.f32 %v1477_v54, %v1445_v35  ;;  %v1329_v11 = vadd.f32 %v1328_v3, %v1314_v2 }
 0x1d7   :  { %v1446_v58 = vadd.f32 %v1438_v53, %v1428_v55  ;;  %v1440_v55 = vperm.slane %v2564_v9, 3 }
 0x1d8   :  { %1493 = vst [vmem:[#allocation7] sm:$0xff] %v1485_v56  ;;  %v1288_v59 = vpop.f32.mrf.mxu2 }
 0x1d9   :  { %v2359_v60 = vpop.eup %2358  ;;  %v1454_v61 = vmul.f32 0.5, %v1446_v58  ;;  %v1289_v62 = vadd.f32 %v1288_v59, %v1275_v57  ;;  %v1302_v63 = vpop.f32.mrf.mxu3 }
 0x1da   :  { %v1473_v0 = vadd.f32 1.0, %v2359_v60 }
 0x1db   :  { %2360 = vtanh.f32 %v1454_v61  ;;  %v1303_v4 = vadd.f32 %v1302_v63, %v1289_v62 }
 0x1dc   :  { %v1481_v5 = vmul.f32 0.5, %v1473_v0  ;;  %v1316_v23 = vpop.f32.mrf.mxu0 }
 0x1dd   :  { %v1432_v6 = vmul.f32 %v1420_v50, %v1303_v4  ;;  %v1330_v24 = vpop.f32.mrf.mxu1 }
 0x1de   :  { %v1489_v10 = vmul.f32 %v1481_v5, %v1449_v42  ;;  %v1331_v28 = vadd.f32 %v1330_v24, %v1316_v23 }
 0x1df   :  { %v1450_v7 = vadd.f32 %v1438_v53, %v1432_v6  ;;  %v1422_v53 = vperm.slane %v2559_v25, 3 }
 0x1e0   :  { %1497 = vst [vmem:[#allocation7 + $0x20] sm:$0xff] %v1489_v10  ;;  %v1342_v12 = vpop.f32.mrf.mxu2 }
 0x1e1   :  { %v2361_v8 = vpop.eup %2360  ;;  %v1458_v13 = vmul.f32 0.5, %v1450_v7  ;;  %v1343_v14 = vadd.f32 %v1342_v12, %v1329_v11  ;;  %v1356_v15 = vpop.f32.mrf.mxu3 }
 0x1e2   :  { %v1470_v17 = vadd.f32 1.0, %v2361_v8 }
 0x1e3   :  { %2362 = vtanh.f32 %v1458_v13  ;;  %v1357_v18 = vadd.f32 %v1356_v15, %v1343_v14 }
 0x1e4   :  { %v1478_v20 = vmul.f32 0.5, %v1470_v17 }
 0x1e5   :  { %v1429_v27 = vmul.f32 %v1421_v16, %v1357_v18 }
 0x1e6   :  { %v1486_v1 = vmul.f32 %v1478_v20, %v1446_v58 }
 0x1e7   :  { %v1447_v30 = vadd.f32 %v1439_v19, %v1429_v27 }
 0x1e8   :  { %1494 = vst [vmem:[#allocation7 + $0x8] sm:$0xff] %v1486_v1  ;;  %v1344_v34 = vpop.f32.mrf.mxu2 }
 0x1e9   :  { %v2363_v29 = vpop.eup %2362  ;;  %v1455_v26 = vmul.f32 0.5, %v1447_v30  ;;  %v1345_v31 = vadd.f32 %v1344_v34, %v1331_v28  ;;  %v1358_v33 = vpop.f32.mrf.mxu3 }
 0x1ea   :  { %v1474_v32 = vadd.f32 1.0, %v2363_v29 }
 0x1eb   :  { %2364 = vtanh.f32 %v1455_v26  ;;  %v1359_v21 = vadd.f32 %v1358_v33, %v1345_v31 }
 0x1ec   :  { %v1482_v35 = vmul.f32 0.5, %v1474_v32 }
 0x1ed   :  { %v1433_v37 = vmul.f32 %v1421_v16, %v1359_v21 }
 0x1ee   :  { %v1490_v38 = vmul.f32 %v1482_v35, %v1450_v7 }
 0x1ef   :  { %v1451_v22 = vadd.f32 %v1439_v19, %v1433_v37 }
 0x1f0   :  { %1498 = vst [vmem:[#allocation7 + $0x28] sm:$0xff] %v1490_v38 }
 0x1f1   :  { %v2365_v36 = vpop.eup %2364  ;;  %v1459_v39 = vmul.f32 0.5, %v1451_v22 }
 0x1f2   :  { %v1471_v40 = vadd.f32 1.0, %v2365_v36 }
 0x1f3   :  { %2366 = vtanh.f32 %v1459_v39 }
 0x1f4   :  { %v1479_v41 = vmul.f32 0.5, %v1471_v40  ;;  %v1370_v43 = vpop.f32.mrf.mxu0 }
 0x1f5   :  { %v1384_v44 = vpop.f32.mrf.mxu1 }
 0x1f6   :  { %v1487_v42 = vmul.f32 %v1479_v41, %v1447_v30  ;;  %v1385_v48 = vadd.f32 %v1384_v44, %v1370_v43 }
 0x1f8   :  { %1495 = vst [vmem:[#allocation7 + $0x10] sm:$0xff] %v1487_v42 }
 0x1f9   :  { %v2367_v45 = vpop.eup %2366 }
 0x1fa   :  { %v1475_v46 = vadd.f32 1.0, %v2367_v45 }
 0x1fc   :  { %v1483_v47 = vmul.f32 0.5, %v1475_v46  ;;  %v1372_v56 = vpop.f32.mrf.mxu0 }
 0x1fd   :  { %v1386_v57 = vpop.f32.mrf.mxu1 }
 0x1fe   :  { %v1491_v50 = vmul.f32 %v1483_v47, %v1451_v22  ;;  %v1387_v59 = vadd.f32 %v1386_v57, %v1372_v56 }
 0x200   :  { %v1398_v49 = vpop.f32.mrf.mxu2  ;;  %1499 = vst [vmem:[#allocation7 + $0x30] sm:$0xff] %v1491_v50 }
 0x201   :  { %v1399_v51 = vadd.f32 %v1398_v49, %v1385_v48  ;;  %v1412_v52 = vpop.f32.mrf.mxu3 }
 0x203   :  { %v1413_v54 = vadd.f32 %v1412_v52, %v1399_v51 }
 0x205   :  { %v1430_v58 = vmul.f32 %v1422_v53, %v1413_v54 }
 0x207   :  { %v1448_v60 = vadd.f32 %v1440_v55, %v1430_v58 }
 0x208   :  { %v1400_v61 = vpop.f32.mrf.mxu2 }
 0x209   :  { %v1456_v62 = vmul.f32 0.5, %v1448_v60  ;;  %v1401_v63 = vadd.f32 %v1400_v61, %v1387_v59  ;;  %v1414_v0 = vpop.f32.mrf.mxu3 }
 0x20b   :  { %2368 = vtanh.f32 %v1456_v62  ;;  %v1415_v2 = vadd.f32 %v1414_v0, %v1401_v63 }
 0x20d   :  { %v1434_v3 = vmul.f32 %v1422_v53, %v1415_v2 }
 0x20f   :  { %v1452_v4 = vadd.f32 %v1440_v55, %v1434_v3 }
 0x211   :  { %v2369_v5 = vpop.eup %2368  ;;  %v1460_v6 = vmul.f32 0.5, %v1452_v4 }
 0x212   :  { %v1472_v25 = vadd.f32 1.0, %v2369_v5 }
 0x213   :  { %2370 = vtanh.f32 %v1460_v6 }
 0x214   :  { %v1480_v10 = vmul.f32 0.5, %v1472_v25 }
 0x216   :  { %v1488_v11 = vmul.f32 %v1480_v10, %v1448_v60 }
 0x218   :  { %1496 = vst [vmem:[#allocation7 + $0x18] sm:$0xff] %v1488_v11 }
 0x219   :  { %v2371_v9 = vpop.eup %2370 }
 0x21a   :  { %v1476_v7 = vadd.f32 1.0, %v2371_v9 }
 0x21c   :  { %v1484_v12 = vmul.f32 0.5, %v1476_v7 }
 0x21e   :  { %v1492_v8 = vmul.f32 %v1484_v12, %v1452_v4 }
 0x220   :  { %1500 = vst [vmem:[#allocation7 + $0x38] sm:$0xff] %v1492_v8 }
 0x221   :  { %1513 = dma.vmem_to_hbm [thread:$0]  %s1506_s5, 1024, %s1508_s17, [#allocation4], %s2456_s18, %s2456_s18, %s2457_s19  }
 0x222   :  { %2448 = dma.done.wait [#allocation4], 1024  }
 0x223   :  { %2449 = vsyncadd [#allocation4], 4294966272 }
 0x224   :  { %1518 = vsyncpa [#allocation3], 1 }
 0x225   :  { %1519 = vsyncpa [#allocation6], 1 }
 0x226   :  { %1520 = vsyncpa [#allocation4], 1 }

</bundles_post_ra>
